<compile_context>
chip_gen: v7x
topology: tpu7x:2x2x1
jax: 0.10.0
libtpu: 0.0.40
codegen_flags: <defaults>
</compile_context>

<pallas_src>
import functools

import jax
import jax.numpy as jnp
from jax import lax
from jax.experimental import pallas as pl
from jax.experimental.pallas import tpu as pltpu

_SUBLANE = 8  # f32 sublane count of one vreg tile


def _lstm_tagger_kernel(x_ref, wih0_ref, whh0_ref, b0_ref,
                        wih1_ref, whh1_ref, b1_ref, wout_ref, bout_ref,
                        out_ref, *, batch, seq, hidden):
    Bp, S, H = batch, seq, hidden

    # ---------------- hoisted, loop-invariant work ----------------
    # Layer-0 input projection for ALL time steps in one matmul.
    # x_ref is (S*Bp, E), rows ordered s-major (row = s*Bp + b) with Bp == 8,
    # so each per-step slice below is one full sublane-aligned vreg tile.
    x_proj = (jnp.dot(x_ref[...], wih0_ref[...],
                      preferred_element_type=jnp.float32)
              + b0_ref[...])                                   # (S*Bp, 4H)

    whh0 = whh0_ref[...]                                       # (H, 4H)
    wih1 = wih1_ref[...]                                       # (H, 4H)
    whh1 = whh1_ref[...]                                       # (H, 4H)
    b1 = jnp.broadcast_to(b1_ref[...], (Bp, 4 * H))            # hoisted broadcast

    # Lane mask selecting the `g` gate (tanh) vs i/f/o (sigmoid), built once.
    # NOTE: layout stays relayout-free when 4H is a multiple of 128 (H=32 ok).
    lane = lax.broadcasted_iota(jnp.int32, (Bp, 4 * H), 1)
    is_g = (lane >= 2 * H) & (lane < 3 * H)

    def cell(gates, c):
        # Two full-width EUP passes + one lane select instead of four
        # lane-unaligned 32-lane activation calls.
        act = jnp.where(is_g, jnp.tanh(gates), jax.nn.sigmoid(gates))
        i = act[:, 0 * H:1 * H]
        f = act[:, 1 * H:2 * H]
        g = act[:, 2 * H:3 * H]
        o = act[:, 3 * H:4 * H]
        c_new = f * c + i * g
        h_new = o * jnp.tanh(c_new)
        return h_new, c_new

    zeros = jnp.zeros((Bp, H), dtype=jnp.float32)
    h0, c0, h1, c1 = zeros, zeros, zeros, zeros

    # -------- time recurrence, statically unrolled (S static & small) -------
    for t in range(S):
        # Both recurrent matmuls depend only on step t-1 state: push them
        # back-to-back up front so their pop latency hides under the layer-0
        # gate activations below.
        hh0 = jnp.dot(h0, whh0, preferred_element_type=jnp.float32)   # (Bp,4H)
        hh1 = jnp.dot(h1, whh1, preferred_element_type=jnp.float32)   # (Bp,4H)

        # Layer 0: hoisted input projection slice + recurrent term.
        gates0 = x_proj[t * Bp:(t + 1) * Bp, :] + hh0
        h0, c0 = cell(gates0, c0)

        # Layer 1: fresh h0 through W_ih1, plus the already-issued hh1 term.
        gates1 = jnp.dot(h0, wih1, preferred_element_type=jnp.float32) + hh1 + b1
        h1, c1 = cell(gates1, c1)

    # Last time step of the top layer -> Linear -> sigmoid.
    tag_space = jnp.dot(h1, wout_ref[...],
                        preferred_element_type=jnp.float32) + bout_ref[...]
    out_ref[...] = jax.nn.sigmoid(tag_space).astype(out_ref.dtype)


@jax.jit
def lstm_tagger_forward(x, params):
    """x: (B, S, E) float32 (batch_first, like the PyTorch module).
    Returns tag_scores: (B, T) float32."""
    B, S, E = x.shape
    H = params["w_hh0"].shape[0]
    T = params["w_out"].shape[1]

    # Pad batch to a full sublane group: every per-step slice / elementwise op
    # in the kernel becomes a whole (8,128) vreg tile.  Costs zero extra vregs
    # for B <= 8; padded rows are garbage and sliced off at the end.
    Bp = max(_SUBLANE, ((B + _SUBLANE - 1) // _SUBLANE) * _SUBLANE)
    x_pad = jnp.pad(x, ((0, Bp - B), (0, 0), (0, 0)))

    # Reorder to (S, Bp, E) and flatten s-major so the kernel's per-step
    # access is a contiguous, sublane-aligned static slice.
    # TODO(synk): fold this (1,0,2) relayout into how x is produced upstream;
    # at these sizes surrounding XLA ops cost as much as the kernel itself.
    x2d = jnp.transpose(x_pad, (1, 0, 2)).reshape(S * Bp, E)

    kernel = functools.partial(_lstm_tagger_kernel, batch=Bp, seq=S, hidden=H)
    vmem = pl.BlockSpec(memory_space=pltpu.MemorySpace.VMEM)
    operands = (x2d,
                params["w_ih0"], params["w_hh0"], params["b0"],
                params["w_ih1"], params["w_hh1"], params["b1"],
                params["w_out"], params["b_out"])

    out_p = pl.pallas_call(
        kernel,
        out_shape=jax.ShapeDtypeStruct((Bp, T), jnp.float32),
        in_specs=[vmem] * len(operands),
        out_specs=vmem,
    )(*operands)
    return out_p[:B]


def init_params(key, embedding_dim, hidden_dim, tagset_size):
    """Deterministic synthetic parameters.

    PyTorch stores weight_ih_l* as (4H, in_dim) and weight_hh_l* as (4H, H),
    plus two bias vectors per layer.  We store the transposed weights and the
    SUMMED bias (b_ih + b_hh) — mathematically identical forward pass.  When
    porting a real checkpoint, remember to sum the two bias vectors.
    """
    H = hidden_dim
    keys = jax.random.split(key, 8)
    scale = 1.0 / jnp.sqrt(jnp.float32(H))

    def mk(k, shape):
        return jax.random.normal(k, shape, dtype=jnp.float32) * scale

    return {
        "w_ih0": mk(keys[0], (embedding_dim, 4 * H)),
        "w_hh0": mk(keys[1], (H, 4 * H)),
        "b0":    mk(keys[2], (1, 4 * H)),
        "w_ih1": mk(keys[3], (H, 4 * H)),
        "w_hh1": mk(keys[4], (H, 4 * H)),
        "b1":    mk(keys[5], (1, 4 * H)),
        "w_out": mk(keys[6], (H, tagset_size)),
        "b_out": mk(keys[7], (1, tagset_size)),
    }


def _reference_forward(x, params):
    """Pure-JAX reference matching the PyTorch forward (for validation)."""
    B, S, E = x.shape
    H = params["w_hh0"].shape[0]

    def cell(x_t, h, c, w_ih, w_hh, b):
        gates = x_t @ w_ih + h @ w_hh + b
        i = jax.nn.sigmoid(gates[:, 0 * H:1 * H])
        f = jax.nn.sigmoid(gates[:, 1 * H:2 * H])
        g = jnp.tanh(gates[:, 2 * H:3 * H])
        o = jax.nn.sigmoid(gates[:, 3 * H:4 * H])
        c = f * c + i * g
        h = o * jnp.tanh(c)
        return h, c

    h0 = c0 = h1 = c1 = jnp.zeros((B, H), jnp.float32)
    for t in range(S):
        h0, c0 = cell(x[:, t, :], h0, c0,
                      params["w_ih0"], params["w_hh0"], params["b0"])
        h1, c1 = cell(h0, h1, c1,
                      params["w_ih1"], params["w_hh1"], params["b1"])
    return jax.nn.sigmoid(h1 @ params["w_out"] + params["b_out"])


if __name__ == "__main__":
    # Small shapes consistent with the module's forward:
    #   sentence: (batch, seq, embedding_dim)
    batch, seq, embedding_dim, hidden_dim, tagset_size = 2, 8, 16, 32, 8

    key = jax.random.PRNGKey(0)
    k_x, k_p = jax.random.split(key)
    x = jax.random.normal(k_x, (batch, seq, embedding_dim), dtype=jnp.float32)
    params = init_params(k_p, embedding_dim, hidden_dim, tagset_size)

    out = lstm_tagger_forward(x, params)
    out = jax.block_until_ready(out)

    ref = _reference_forward(x, params)

    assert out.shape == (batch, tagset_size)
    assert bool(jnp.all(jnp.isfinite(out)))
    assert bool(jnp.all((out >= 0.0) & (out <= 1.0)))          # sigmoid range
    assert bool(jnp.allclose(out, ref, rtol=1e-4, atol=1e-4))  # matches reference
    print("KERNEL_OK")
</pallas_src>

<mosaic_0001>
module attributes {stable_mosaic.version = 11 : i64} {
  func.func @_lstm_tagger_kernel(%arg0: memref<64x16xf32, #tpu.memory_space<vmem>>, %arg1: memref<16x128xf32, #tpu.memory_space<vmem>>, %arg2: memref<32x128xf32, #tpu.memory_space<vmem>>, %arg3: memref<1x128xf32, #tpu.memory_space<vmem>>, %arg4: memref<32x128xf32, #tpu.memory_space<vmem>>, %arg5: memref<32x128xf32, #tpu.memory_space<vmem>>, %arg6: memref<1x128xf32, #tpu.memory_space<vmem>>, %arg7: memref<32x8xf32, #tpu.memory_space<vmem>>, %arg8: memref<1x8xf32, #tpu.memory_space<vmem>>, %arg9: memref<8x8xf32, #tpu.memory_space<vmem>>) attributes {dimension_semantics = [], scalar_prefetch = 0 : i64, scratch_operands = 0 : i64, tpu.core_type = #tpu.core_type<tc>} {
    %c0 = arith.constant 0 : index
    %c0_0 = arith.constant 0 : index
    %0 = vector.load %arg0[%c0, %c0_0] : memref<64x16xf32, #tpu.memory_space<vmem>>, vector<64x16xf32>
    %c0_1 = arith.constant 0 : index
    %c0_2 = arith.constant 0 : index
    %1 = vector.load %arg1[%c0_1, %c0_2] : memref<16x128xf32, #tpu.memory_space<vmem>>, vector<16x128xf32>
    %cst = arith.constant dense<0.000000e+00> : vector<64x128xf32>
    %2 = tpu.matmul %0, %1, %cst {dimension_numbers = #tpu.dot_dimension_numbers<[1], [0], [0], [1], [0, 0, 1, 1], [], []>} : vector<64x16xf32>, vector<16x128xf32>, vector<64x128xf32> -> vector<64x128xf32>
    %c0_3 = arith.constant 0 : index
    %c0_4 = arith.constant 0 : index
    %3 = vector.load %arg3[%c0_3, %c0_4] : memref<1x128xf32, #tpu.memory_space<vmem>>, vector<1x128xf32>
    %4 = vector.broadcast %3 : vector<1x128xf32> to vector<64x128xf32>
    %5 = arith.addf %2, %4 : vector<64x128xf32>
    %c0_5 = arith.constant 0 : index
    %c0_6 = arith.constant 0 : index
    %6 = vector.load %arg2[%c0_5, %c0_6] : memref<32x128xf32, #tpu.memory_space<vmem>>, vector<32x128xf32>
    %c0_7 = arith.constant 0 : index
    %c0_8 = arith.constant 0 : index
    %7 = vector.load %arg4[%c0_7, %c0_8] : memref<32x128xf32, #tpu.memory_space<vmem>>, vector<32x128xf32>
    %c0_9 = arith.constant 0 : index
    %c0_10 = arith.constant 0 : index
    %8 = vector.load %arg5[%c0_9, %c0_10] : memref<32x128xf32, #tpu.memory_space<vmem>>, vector<32x128xf32>
    %c0_11 = arith.constant 0 : index
    %c0_12 = arith.constant 0 : index
    %9 = vector.load %arg6[%c0_11, %c0_12] : memref<1x128xf32, #tpu.memory_space<vmem>>, vector<1x128xf32>
    %10 = vector.shape_cast %9 : vector<1x128xf32> to vector<1x128xf32>
    %11 = vector.broadcast %10 : vector<1x128xf32> to vector<8x128xf32>
    %12 = tpu.iota {dimensions = array<i32: 1>} : vector<8x128xi32>
    %c64_i32 = arith.constant 64 : i32
    %13 = vector.broadcast %c64_i32 : i32 to vector<8x128xi32>
    %14 = arith.cmpi sge, %12, %13 : vector<8x128xi32>
    %c96_i32 = arith.constant 96 : i32
    %15 = vector.broadcast %c96_i32 : i32 to vector<8x128xi32>
    %16 = arith.cmpi slt, %12, %15 : vector<8x128xi32>
    %17 = arith.andi %14, %16 : vector<8x128xi1>
    %cst_13 = arith.constant 0.000000e+00 : f32
    %18 = vector.broadcast %cst_13 : f32 to vector<8x32xf32>
    %cst_14 = arith.constant dense<0.000000e+00> : vector<8x128xf32>
    %19 = tpu.matmul %18, %6, %cst_14 {dimension_numbers = #tpu.dot_dimension_numbers<[1], [0], [0], [1], [0, 0, 1, 1], [], []>} : vector<8x32xf32>, vector<32x128xf32>, vector<8x128xf32> -> vector<8x128xf32>
    %cst_15 = arith.constant dense<0.000000e+00> : vector<8x128xf32>
    %20 = tpu.matmul %18, %8, %cst_15 {dimension_numbers = #tpu.dot_dimension_numbers<[1], [0], [0], [1], [0, 0, 1, 1], [], []>} : vector<8x32xf32>, vector<32x128xf32>, vector<8x128xf32> -> vector<8x128xf32>
    %21 = vector.extract_strided_slice %5 {offsets = [0, 0], sizes = [8, 128], strides = [1, 1]} : vector<64x128xf32> to vector<8x128xf32>
    %22 = arith.addf %21, %19 : vector<8x128xf32>
    %23 = math.tanh %22 : vector<8x128xf32>
    %24 = arith.negf %22 : vector<8x128xf32>
    %25 = math.exp %24 : vector<8x128xf32>
    %cst_16 = arith.constant 1.000000e+00 : f32
    %26 = vector.broadcast %cst_16 : f32 to vector<8x128xf32>
    %27 = arith.addf %26, %25 : vector<8x128xf32>
    %28 = arith.divf %26, %27 : vector<8x128xf32>
    %29 = arith.select %17, %23, %28 : vector<8x128xi1>, vector<8x128xf32>
    %30 = vector.extract_strided_slice %29 {offsets = [0, 0], sizes = [8, 32], strides = [1, 1]} : vector<8x128xf32> to vector<8x32xf32>
    %31 = vector.extract_strided_slice %29 {offsets = [0, 32], sizes = [8, 32], strides = [1, 1]} : vector<8x128xf32> to vector<8x32xf32>
    %32 = vector.extract_strided_slice %29 {offsets = [0, 64], sizes = [8, 32], strides = [1, 1]} : vector<8x128xf32> to vector<8x32xf32>
    %33 = vector.extract_strided_slice %29 {offsets = [0, 96], sizes = [8, 32], strides = [1, 1]} : vector<8x128xf32> to vector<8x32xf32>
    %34 = arith.mulf %31, %18 : vector<8x32xf32>
    %35 = arith.mulf %30, %32 : vector<8x32xf32>
    %36 = arith.addf %34, %35 : vector<8x32xf32>
    %37 = math.tanh %36 : vector<8x32xf32>
    %38 = arith.mulf %33, %37 : vector<8x32xf32>
    %cst_17 = arith.constant dense<0.000000e+00> : vector<8x128xf32>
    %39 = tpu.matmul %38, %7, %cst_17 {dimension_numbers = #tpu.dot_dimension_numbers<[1], [0], [0], [1], [0, 0, 1, 1], [], []>} : vector<8x32xf32>, vector<32x128xf32>, vector<8x128xf32> -> vector<8x128xf32>
    %40 = arith.addf %39, %20 : vector<8x128xf32>
    %41 = arith.addf %40, %11 : vector<8x128xf32>
    %42 = math.tanh %41 : vector<8x128xf32>
    %43 = arith.negf %41 : vector<8x128xf32>
    %44 = math.exp %43 : vector<8x128xf32>
    %cst_18 = arith.constant 1.000000e+00 : f32
    %45 = vector.broadcast %cst_18 : f32 to vector<8x128xf32>
    %46 = arith.addf %45, %44 : vector<8x128xf32>
    %47 = arith.divf %45, %46 : vector<8x128xf32>
    %48 = arith.select %17, %42, %47 : vector<8x128xi1>, vector<8x128xf32>
    %49 = vector.extract_strided_slice %48 {offsets = [0, 0], sizes = [8, 32], strides = [1, 1]} : vector<8x128xf32> to vector<8x32xf32>
    %50 = vector.extract_strided_slice %48 {offsets = [0, 32], sizes = [8, 32], strides = [1, 1]} : vector<8x128xf32> to vector<8x32xf32>
    %51 = vector.extract_strided_slice %48 {offsets = [0, 64], sizes = [8, 32], strides = [1, 1]} : vector<8x128xf32> to vector<8x32xf32>
    %52 = vector.extract_strided_slice %48 {offsets = [0, 96], sizes = [8, 32], strides = [1, 1]} : vector<8x128xf32> to vector<8x32xf32>
    %53 = arith.mulf %50, %18 : vector<8x32xf32>
    %54 = arith.mulf %49, %51 : vector<8x32xf32>
    %55 = arith.addf %53, %54 : vector<8x32xf32>
    %56 = math.tanh %55 : vector<8x32xf32>
    %57 = arith.mulf %52, %56 : vector<8x32xf32>
    %cst_19 = arith.constant dense<0.000000e+00> : vector<8x128xf32>
    %58 = tpu.matmul %38, %6, %cst_19 {dimension_numbers = #tpu.dot_dimension_numbers<[1], [0], [0], [1], [0, 0, 1, 1], [], []>} : vector<8x32xf32>, vector<32x128xf32>, vector<8x128xf32> -> vector<8x128xf32>
    %cst_20 = arith.constant dense<0.000000e+00> : vector<8x128xf32>
    %59 = tpu.matmul %57, %8, %cst_20 {dimension_numbers = #tpu.dot_dimension_numbers<[1], [0], [0], [1], [0, 0, 1, 1], [], []>} : vector<8x32xf32>, vector<32x128xf32>, vector<8x128xf32> -> vector<8x128xf32>
    %60 = vector.extract_strided_slice %5 {offsets = [8, 0], sizes = [8, 128], strides = [1, 1]} : vector<64x128xf32> to vector<8x128xf32>
    %61 = arith.addf %60, %58 : vector<8x128xf32>
    %62 = math.tanh %61 : vector<8x128xf32>
    %63 = arith.negf %61 : vector<8x128xf32>
    %64 = math.exp %63 : vector<8x128xf32>
    %cst_21 = arith.constant 1.000000e+00 : f32
    %65 = vector.broadcast %cst_21 : f32 to vector<8x128xf32>
    %66 = arith.addf %65, %64 : vector<8x128xf32>
    %67 = arith.divf %65, %66 : vector<8x128xf32>
    %68 = arith.select %17, %62, %67 : vector<8x128xi1>, vector<8x128xf32>
    %69 = vector.extract_strided_slice %68 {offsets = [0, 0], sizes = [8, 32], strides = [1, 1]} : vector<8x128xf32> to vector<8x32xf32>
    %70 = vector.extract_strided_slice %68 {offsets = [0, 32], sizes = [8, 32], strides = [1, 1]} : vector<8x128xf32> to vector<8x32xf32>
    %71 = vector.extract_strided_slice %68 {offsets = [0, 64], sizes = [8, 32], strides = [1, 1]} : vector<8x128xf32> to vector<8x32xf32>
    %72 = vector.extract_strided_slice %68 {offsets = [0, 96], sizes = [8, 32], strides = [1, 1]} : vector<8x128xf32> to vector<8x32xf32>
    %73 = arith.mulf %70, %36 : vector<8x32xf32>
    %74 = arith.mulf %69, %71 : vector<8x32xf32>
    %75 = arith.addf %73, %74 : vector<8x32xf32>
    %76 = math.tanh %75 : vector<8x32xf32>
    %77 = arith.mulf %72, %76 : vector<8x32xf32>
    %cst_22 = arith.constant dense<0.000000e+00> : vector<8x128xf32>
    %78 = tpu.matmul %77, %7, %cst_22 {dimension_numbers = #tpu.dot_dimension_numbers<[1], [0], [0], [1], [0, 0, 1, 1], [], []>} : vector<8x32xf32>, vector<32x128xf32>, vector<8x128xf32> -> vector<8x128xf32>
    %79 = arith.addf %78, %59 : vector<8x128xf32>
    %80 = arith.addf %79, %11 : vector<8x128xf32>
    %81 = math.tanh %80 : vector<8x128xf32>
    %82 = arith.negf %80 : vector<8x128xf32>
    %83 = math.exp %82 : vector<8x128xf32>
    %cst_23 = arith.constant 1.000000e+00 : f32
    %84 = vector.broadcast %cst_23 : f32 to vector<8x128xf32>
    %85 = arith.addf %84, %83 : vector<8x128xf32>
    %86 = arith.divf %84, %85 : vector<8x128xf32>
    %87 = arith.select %17, %81, %86 : vector<8x128xi1>, vector<8x128xf32>
    %88 = vector.extract_strided_slice %87 {offsets = [0, 0], sizes = [8, 32], strides = [1, 1]} : vector<8x128xf32> to vector<8x32xf32>
    %89 = vector.extract_strided_slice %87 {offsets = [0, 32], sizes = [8, 32], strides = [1, 1]} : vector<8x128xf32> to vector<8x32xf32>
    %90 = vector.extract_strided_slice %87 {offsets = [0, 64], sizes = [8, 32], strides = [1, 1]} : vector<8x128xf32> to vector<8x32xf32>
    %91 = vector.extract_strided_slice %87 {offsets = [0, 96], sizes = [8, 32], strides = [1, 1]} : vector<8x128xf32> to vector<8x32xf32>
    %92 = arith.mulf %89, %55 : vector<8x32xf32>
    %93 = arith.mulf %88, %90 : vector<8x32xf32>
    %94 = arith.addf %92, %93 : vector<8x32xf32>
    %95 = math.tanh %94 : vector<8x32xf32>
    %96 = arith.mulf %91, %95 : vector<8x32xf32>
    %cst_24 = arith.constant dense<0.000000e+00> : vector<8x128xf32>
    %97 = tpu.matmul %77, %6, %cst_24 {dimension_numbers = #tpu.dot_dimension_numbers<[1], [0], [0], [1], [0, 0, 1, 1], [], []>} : vector<8x32xf32>, vector<32x128xf32>, vector<8x128xf32> -> vector<8x128xf32>
    %cst_25 = arith.constant dense<0.000000e+00> : vector<8x128xf32>
    %98 = tpu.matmul %96, %8, %cst_25 {dimension_numbers = #tpu.dot_dimension_numbers<[1], [0], [0], [1], [0, 0, 1, 1], [], []>} : vector<8x32xf32>, vector<32x128xf32>, vector<8x128xf32> -> vector<8x128xf32>
    %99 = vector.extract_strided_slice %5 {offsets = [16, 0], sizes = [8, 128], strides = [1, 1]} : vector<64x128xf32> to vector<8x128xf32>
    %100 = arith.addf %99, %97 : vector<8x128xf32>
    %101 = math.tanh %100 : vector<8x128xf32>
    %102 = arith.negf %100 : vector<8x128xf32>
    %103 = math.exp %102 : vector<8x128xf32>
    %cst_26 = arith.constant 1.000000e+00 : f32
    %104 = vector.broadcast %cst_26 : f32 to vector<8x128xf32>
    %105 = arith.addf %104, %103 : vector<8x128xf32>
    %106 = arith.divf %104, %105 : vector<8x128xf32>
    %107 = arith.select %17, %101, %106 : vector<8x128xi1>, vector<8x128xf32>
    %108 = vector.extract_strided_slice %107 {offsets = [0, 0], sizes = [8, 32], strides = [1, 1]} : vector<8x128xf32> to vector<8x32xf32>
    %109 = vector.extract_strided_slice %107 {offsets = [0, 32], sizes = [8, 32], strides = [1, 1]} : vector<8x128xf32> to vector<8x32xf32>
    %110 = vector.extract_strided_slice %107 {offsets = [0, 64], sizes = [8, 32], strides = [1, 1]} : vector<8x128xf32> to vector<8x32xf32>
    %111 = vector.extract_strided_slice %107 {offsets = [0, 96], sizes = [8, 32], strides = [1, 1]} : vector<8x128xf32> to vector<8x32xf32>
    %112 = arith.mulf %109, %75 : vector<8x32xf32>
    %113 = arith.mulf %108, %110 : vector<8x32xf32>
    %114 = arith.addf %112, %113 : vector<8x32xf32>
    %115 = math.tanh %114 : vector<8x32xf32>
    %116 = arith.mulf %111, %115 : vector<8x32xf32>
    %cst_27 = arith.constant dense<0.000000e+00> : vector<8x128xf32>
    %117 = tpu.matmul %116, %7, %cst_27 {dimension_numbers = #tpu.dot_dimension_numbers<[1], [0], [0], [1], [0, 0, 1, 1], [], []>} : vector<8x32xf32>, vector<32x128xf32>, vector<8x128xf32> -> vector<8x128xf32>
    %118 = arith.addf %117, %98 : vector<8x128xf32>
    %119 = arith.addf %118, %11 : vector<8x128xf32>
    %120 = math.tanh %119 : vector<8x128xf32>
    %121 = arith.negf %119 : vector<8x128xf32>
    %122 = math.exp %121 : vector<8x128xf32>
    %cst_28 = arith.constant 1.000000e+00 : f32
    %123 = vector.broadcast %cst_28 : f32 to vector<8x128xf32>
    %124 = arith.addf %123, %122 : vector<8x128xf32>
    %125 = arith.divf %123, %124 : vector<8x128xf32>
    %126 = arith.select %17, %120, %125 : vector<8x128xi1>, vector<8x128xf32>
    %127 = vector.extract_strided_slice %126 {offsets = [0, 0], sizes = [8, 32], strides = [1, 1]} : vector<8x128xf32> to vector<8x32xf32>
    %128 = vector.extract_strided_slice %126 {offsets = [0, 32], sizes = [8, 32], strides = [1, 1]} : vector<8x128xf32> to vector<8x32xf32>
    %129 = vector.extract_strided_slice %126 {offsets = [0, 64], sizes = [8, 32], strides = [1, 1]} : vector<8x128xf32> to vector<8x32xf32>
    %130 = vector.extract_strided_slice %126 {offsets = [0, 96], sizes = [8, 32], strides = [1, 1]} : vector<8x128xf32> to vector<8x32xf32>
    %131 = arith.mulf %128, %94 : vector<8x32xf32>
    %132 = arith.mulf %127, %129 : vector<8x32xf32>
    %133 = arith.addf %131, %132 : vector<8x32xf32>
    %134 = math.tanh %133 : vector<8x32xf32>
    %135 = arith.mulf %130, %134 : vector<8x32xf32>
    %cst_29 = arith.constant dense<0.000000e+00> : vector<8x128xf32>
    %136 = tpu.matmul %116, %6, %cst_29 {dimension_numbers = #tpu.dot_dimension_numbers<[1], [0], [0], [1], [0, 0, 1, 1], [], []>} : vector<8x32xf32>, vector<32x128xf32>, vector<8x128xf32> -> vector<8x128xf32>
    %cst_30 = arith.constant dense<0.000000e+00> : vector<8x128xf32>
    %137 = tpu.matmul %135, %8, %cst_30 {dimension_numbers = #tpu.dot_dimension_numbers<[1], [0], [0], [1], [0, 0, 1, 1], [], []>} : vector<8x32xf32>, vector<32x128xf32>, vector<8x128xf32> -> vector<8x128xf32>
    %138 = vector.extract_strided_slice %5 {offsets = [24, 0], sizes = [8, 128], strides = [1, 1]} : vector<64x128xf32> to vector<8x128xf32>
    %139 = arith.addf %138, %136 : vector<8x128xf32>
    %140 = math.tanh %139 : vector<8x128xf32>
    %141 = arith.negf %139 : vector<8x128xf32>
    %142 = math.exp %141 : vector<8x128xf32>
    %cst_31 = arith.constant 1.000000e+00 : f32
    %143 = vector.broadcast %cst_31 : f32 to vector<8x128xf32>
    %144 = arith.addf %143, %142 : vector<8x128xf32>
    %145 = arith.divf %143, %144 : vector<8x128xf32>
    %146 = arith.select %17, %140, %145 : vector<8x128xi1>, vector<8x128xf32>
    %147 = vector.extract_strided_slice %146 {offsets = [0, 0], sizes = [8, 32], strides = [1, 1]} : vector<8x128xf32> to vector<8x32xf32>
    %148 = vector.extract_strided_slice %146 {offsets = [0, 32], sizes = [8, 32], strides = [1, 1]} : vector<8x128xf32> to vector<8x32xf32>
    %149 = vector.extract_strided_slice %146 {offsets = [0, 64], sizes = [8, 32], strides = [1, 1]} : vector<8x128xf32> to vector<8x32xf32>
    %150 = vector.extract_strided_slice %146 {offsets = [0, 96], sizes = [8, 32], strides = [1, 1]} : vector<8x128xf32> to vector<8x32xf32>
    %151 = arith.mulf %148, %114 : vector<8x32xf32>
    %152 = arith.mulf %147, %149 : vector<8x32xf32>
    %153 = arith.addf %151, %152 : vector<8x32xf32>
    %154 = math.tanh %153 : vector<8x32xf32>
    %155 = arith.mulf %150, %154 : vector<8x32xf32>
    %cst_32 = arith.constant dense<0.000000e+00> : vector<8x128xf32>
    %156 = tpu.matmul %155, %7, %cst_32 {dimension_numbers = #tpu.dot_dimension_numbers<[1], [0], [0], [1], [0, 0, 1, 1], [], []>} : vector<8x32xf32>, vector<32x128xf32>, vector<8x128xf32> -> vector<8x128xf32>
    %157 = arith.addf %156, %137 : vector<8x128xf32>
    %158 = arith.addf %157, %11 : vector<8x128xf32>
    %159 = math.tanh %158 : vector<8x128xf32>
    %160 = arith.negf %158 : vector<8x128xf32>
    %161 = math.exp %160 : vector<8x128xf32>
    %cst_33 = arith.constant 1.000000e+00 : f32
    %162 = vector.broadcast %cst_33 : f32 to vector<8x128xf32>
    %163 = arith.addf %162, %161 : vector<8x128xf32>
    %164 = arith.divf %162, %163 : vector<8x128xf32>
    %165 = arith.select %17, %159, %164 : vector<8x128xi1>, vector<8x128xf32>
    %166 = vector.extract_strided_slice %165 {offsets = [0, 0], sizes = [8, 32], strides = [1, 1]} : vector<8x128xf32> to vector<8x32xf32>
    %167 = vector.extract_strided_slice %165 {offsets = [0, 32], sizes = [8, 32], strides = [1, 1]} : vector<8x128xf32> to vector<8x32xf32>
    %168 = vector.extract_strided_slice %165 {offsets = [0, 64], sizes = [8, 32], strides = [1, 1]} : vector<8x128xf32> to vector<8x32xf32>
    %169 = vector.extract_strided_slice %165 {offsets = [0, 96], sizes = [8, 32], strides = [1, 1]} : vector<8x128xf32> to vector<8x32xf32>
    %170 = arith.mulf %167, %133 : vector<8x32xf32>
    %171 = arith.mulf %166, %168 : vector<8x32xf32>
    %172 = arith.addf %170, %171 : vector<8x32xf32>
    %173 = math.tanh %172 : vector<8x32xf32>
    %174 = arith.mulf %169, %173 : vector<8x32xf32>
    %cst_34 = arith.constant dense<0.000000e+00> : vector<8x128xf32>
    %175 = tpu.matmul %155, %6, %cst_34 {dimension_numbers = #tpu.dot_dimension_numbers<[1], [0], [0], [1], [0, 0, 1, 1], [], []>} : vector<8x32xf32>, vector<32x128xf32>, vector<8x128xf32> -> vector<8x128xf32>
    %cst_35 = arith.constant dense<0.000000e+00> : vector<8x128xf32>
    %176 = tpu.matmul %174, %8, %cst_35 {dimension_numbers = #tpu.dot_dimension_numbers<[1], [0], [0], [1], [0, 0, 1, 1], [], []>} : vector<8x32xf32>, vector<32x128xf32>, vector<8x128xf32> -> vector<8x128xf32>
    %177 = vector.extract_strided_slice %5 {offsets = [32, 0], sizes = [8, 128], strides = [1, 1]} : vector<64x128xf32> to vector<8x128xf32>
    %178 = arith.addf %177, %175 : vector<8x128xf32>
    %179 = math.tanh %178 : vector<8x128xf32>
    %180 = arith.negf %178 : vector<8x128xf32>
    %181 = math.exp %180 : vector<8x128xf32>
    %cst_36 = arith.constant 1.000000e+00 : f32
    %182 = vector.broadcast %cst_36 : f32 to vector<8x128xf32>
    %183 = arith.addf %182, %181 : vector<8x128xf32>
    %184 = arith.divf %182, %183 : vector<8x128xf32>
    %185 = arith.select %17, %179, %184 : vector<8x128xi1>, vector<8x128xf32>
    %186 = vector.extract_strided_slice %185 {offsets = [0, 0], sizes = [8, 32], strides = [1, 1]} : vector<8x128xf32> to vector<8x32xf32>
    %187 = vector.extract_strided_slice %185 {offsets = [0, 32], sizes = [8, 32], strides = [1, 1]} : vector<8x128xf32> to vector<8x32xf32>
    %188 = vector.extract_strided_slice %185 {offsets = [0, 64], sizes = [8, 32], strides = [1, 1]} : vector<8x128xf32> to vector<8x32xf32>
    %189 = vector.extract_strided_slice %185 {offsets = [0, 96], sizes = [8, 32], strides = [1, 1]} : vector<8x128xf32> to vector<8x32xf32>
    %190 = arith.mulf %187, %153 : vector<8x32xf32>
    %191 = arith.mulf %186, %188 : vector<8x32xf32>
    %192 = arith.addf %190, %191 : vector<8x32xf32>
    %193 = math.tanh %192 : vector<8x32xf32>
    %194 = arith.mulf %189, %193 : vector<8x32xf32>
    %cst_37 = arith.constant dense<0.000000e+00> : vector<8x128xf32>
    %195 = tpu.matmul %194, %7, %cst_37 {dimension_numbers = #tpu.dot_dimension_numbers<[1], [0], [0], [1], [0, 0, 1, 1], [], []>} : vector<8x32xf32>, vector<32x128xf32>, vector<8x128xf32> -> vector<8x128xf32>
    %196 = arith.addf %195, %176 : vector<8x128xf32>
    %197 = arith.addf %196, %11 : vector<8x128xf32>
    %198 = math.tanh %197 : vector<8x128xf32>
    %199 = arith.negf %197 : vector<8x128xf32>
    %200 = math.exp %199 : vector<8x128xf32>
    %cst_38 = arith.constant 1.000000e+00 : f32
    %201 = vector.broadcast %cst_38 : f32 to vector<8x128xf32>
    %202 = arith.addf %201, %200 : vector<8x128xf32>
    %203 = arith.divf %201, %202 : vector<8x128xf32>
    %204 = arith.select %17, %198, %203 : vector<8x128xi1>, vector<8x128xf32>
    %205 = vector.extract_strided_slice %204 {offsets = [0, 0], sizes = [8, 32], strides = [1, 1]} : vector<8x128xf32> to vector<8x32xf32>
    %206 = vector.extract_strided_slice %204 {offsets = [0, 32], sizes = [8, 32], strides = [1, 1]} : vector<8x128xf32> to vector<8x32xf32>
    %207 = vector.extract_strided_slice %204 {offsets = [0, 64], sizes = [8, 32], strides = [1, 1]} : vector<8x128xf32> to vector<8x32xf32>
    %208 = vector.extract_strided_slice %204 {offsets = [0, 96], sizes = [8, 32], strides = [1, 1]} : vector<8x128xf32> to vector<8x32xf32>
    %209 = arith.mulf %206, %172 : vector<8x32xf32>
    %210 = arith.mulf %205, %207 : vector<8x32xf32>
    %211 = arith.addf %209, %210 : vector<8x32xf32>
    %212 = math.tanh %211 : vector<8x32xf32>
    %213 = arith.mulf %208, %212 : vector<8x32xf32>
    %cst_39 = arith.constant dense<0.000000e+00> : vector<8x128xf32>
    %214 = tpu.matmul %194, %6, %cst_39 {dimension_numbers = #tpu.dot_dimension_numbers<[1], [0], [0], [1], [0, 0, 1, 1], [], []>} : vector<8x32xf32>, vector<32x128xf32>, vector<8x128xf32> -> vector<8x128xf32>
    %cst_40 = arith.constant dense<0.000000e+00> : vector<8x128xf32>
    %215 = tpu.matmul %213, %8, %cst_40 {dimension_numbers = #tpu.dot_dimension_numbers<[1], [0], [0], [1], [0, 0, 1, 1], [], []>} : vector<8x32xf32>, vector<32x128xf32>, vector<8x128xf32> -> vector<8x128xf32>
    %216 = vector.extract_strided_slice %5 {offsets = [40, 0], sizes = [8, 128], strides = [1, 1]} : vector<64x128xf32> to vector<8x128xf32>
    %217 = arith.addf %216, %214 : vector<8x128xf32>
    %218 = math.tanh %217 : vector<8x128xf32>
    %219 = arith.negf %217 : vector<8x128xf32>
    %220 = math.exp %219 : vector<8x128xf32>
    %cst_41 = arith.constant 1.000000e+00 : f32
    %221 = vector.broadcast %cst_41 : f32 to vector<8x128xf32>
    %222 = arith.addf %221, %220 : vector<8x128xf32>
    %223 = arith.divf %221, %222 : vector<8x128xf32>
    %224 = arith.select %17, %218, %223 : vector<8x128xi1>, vector<8x128xf32>
    %225 = vector.extract_strided_slice %224 {offsets = [0, 0], sizes = [8, 32], strides = [1, 1]} : vector<8x128xf32> to vector<8x32xf32>
    %226 = vector.extract_strided_slice %224 {offsets = [0, 32], sizes = [8, 32], strides = [1, 1]} : vector<8x128xf32> to vector<8x32xf32>
    %227 = vector.extract_strided_slice %224 {offsets = [0, 64], sizes = [8, 32], strides = [1, 1]} : vector<8x128xf32> to vector<8x32xf32>
    %228 = vector.extract_strided_slice %224 {offsets = [0, 96], sizes = [8, 32], strides = [1, 1]} : vector<8x128xf32> to vector<8x32xf32>
    %229 = arith.mulf %226, %192 : vector<8x32xf32>
    %230 = arith.mulf %225, %227 : vector<8x32xf32>
    %231 = arith.addf %229, %230 : vector<8x32xf32>
    %232 = math.tanh %231 : vector<8x32xf32>
    %233 = arith.mulf %228, %232 : vector<8x32xf32>
    %cst_42 = arith.constant dense<0.000000e+00> : vector<8x128xf32>
    %234 = tpu.matmul %233, %7, %cst_42 {dimension_numbers = #tpu.dot_dimension_numbers<[1], [0], [0], [1], [0, 0, 1, 1], [], []>} : vector<8x32xf32>, vector<32x128xf32>, vector<8x128xf32> -> vector<8x128xf32>
    %235 = arith.addf %234, %215 : vector<8x128xf32>
    %236 = arith.addf %235, %11 : vector<8x128xf32>
    %237 = math.tanh %236 : vector<8x128xf32>
    %238 = arith.negf %236 : vector<8x128xf32>
    %239 = math.exp %238 : vector<8x128xf32>
    %cst_43 = arith.constant 1.000000e+00 : f32
    %240 = vector.broadcast %cst_43 : f32 to vector<8x128xf32>
    %241 = arith.addf %240, %239 : vector<8x128xf32>
    %242 = arith.divf %240, %241 : vector<8x128xf32>
    %243 = arith.select %17, %237, %242 : vector<8x128xi1>, vector<8x128xf32>
    %244 = vector.extract_strided_slice %243 {offsets = [0, 0], sizes = [8, 32], strides = [1, 1]} : vector<8x128xf32> to vector<8x32xf32>
    %245 = vector.extract_strided_slice %243 {offsets = [0, 32], sizes = [8, 32], strides = [1, 1]} : vector<8x128xf32> to vector<8x32xf32>
    %246 = vector.extract_strided_slice %243 {offsets = [0, 64], sizes = [8, 32], strides = [1, 1]} : vector<8x128xf32> to vector<8x32xf32>
    %247 = vector.extract_strided_slice %243 {offsets = [0, 96], sizes = [8, 32], strides = [1, 1]} : vector<8x128xf32> to vector<8x32xf32>
    %248 = arith.mulf %245, %211 : vector<8x32xf32>
    %249 = arith.mulf %244, %246 : vector<8x32xf32>
    %250 = arith.addf %248, %249 : vector<8x32xf32>
    %251 = math.tanh %250 : vector<8x32xf32>
    %252 = arith.mulf %247, %251 : vector<8x32xf32>
    %cst_44 = arith.constant dense<0.000000e+00> : vector<8x128xf32>
    %253 = tpu.matmul %233, %6, %cst_44 {dimension_numbers = #tpu.dot_dimension_numbers<[1], [0], [0], [1], [0, 0, 1, 1], [], []>} : vector<8x32xf32>, vector<32x128xf32>, vector<8x128xf32> -> vector<8x128xf32>
    %cst_45 = arith.constant dense<0.000000e+00> : vector<8x128xf32>
    %254 = tpu.matmul %252, %8, %cst_45 {dimension_numbers = #tpu.dot_dimension_numbers<[1], [0], [0], [1], [0, 0, 1, 1], [], []>} : vector<8x32xf32>, vector<32x128xf32>, vector<8x128xf32> -> vector<8x128xf32>
    %255 = vector.extract_strided_slice %5 {offsets = [48, 0], sizes = [8, 128], strides = [1, 1]} : vector<64x128xf32> to vector<8x128xf32>
    %256 = arith.addf %255, %253 : vector<8x128xf32>
    %257 = math.tanh %256 : vector<8x128xf32>
    %258 = arith.negf %256 : vector<8x128xf32>
    %259 = math.exp %258 : vector<8x128xf32>
    %cst_46 = arith.constant 1.000000e+00 : f32
    %260 = vector.broadcast %cst_46 : f32 to vector<8x128xf32>
    %261 = arith.addf %260, %259 : vector<8x128xf32>
    %262 = arith.divf %260, %261 : vector<8x128xf32>
    %263 = arith.select %17, %257, %262 : vector<8x128xi1>, vector<8x128xf32>
    %264 = vector.extract_strided_slice %263 {offsets = [0, 0], sizes = [8, 32], strides = [1, 1]} : vector<8x128xf32> to vector<8x32xf32>
    %265 = vector.extract_strided_slice %263 {offsets = [0, 32], sizes = [8, 32], strides = [1, 1]} : vector<8x128xf32> to vector<8x32xf32>
    %266 = vector.extract_strided_slice %263 {offsets = [0, 64], sizes = [8, 32], strides = [1, 1]} : vector<8x128xf32> to vector<8x32xf32>
    %267 = vector.extract_strided_slice %263 {offsets = [0, 96], sizes = [8, 32], strides = [1, 1]} : vector<8x128xf32> to vector<8x32xf32>
    %268 = arith.mulf %265, %231 : vector<8x32xf32>
    %269 = arith.mulf %264, %266 : vector<8x32xf32>
    %270 = arith.addf %268, %269 : vector<8x32xf32>
    %271 = math.tanh %270 : vector<8x32xf32>
    %272 = arith.mulf %267, %271 : vector<8x32xf32>
    %cst_47 = arith.constant dense<0.000000e+00> : vector<8x128xf32>
    %273 = tpu.matmul %272, %7, %cst_47 {dimension_numbers = #tpu.dot_dimension_numbers<[1], [0], [0], [1], [0, 0, 1, 1], [], []>} : vector<8x32xf32>, vector<32x128xf32>, vector<8x128xf32> -> vector<8x128xf32>
    %274 = arith.addf %273, %254 : vector<8x128xf32>
    %275 = arith.addf %274, %11 : vector<8x128xf32>
    %276 = math.tanh %275 : vector<8x128xf32>
    %277 = arith.negf %275 : vector<8x128xf32>
    %278 = math.exp %277 : vector<8x128xf32>
    %cst_48 = arith.constant 1.000000e+00 : f32
    %279 = vector.broadcast %cst_48 : f32 to vector<8x128xf32>
    %280 = arith.addf %279, %278 : vector<8x128xf32>
    %281 = arith.divf %279, %280 : vector<8x128xf32>
    %282 = arith.select %17, %276, %281 : vector<8x128xi1>, vector<8x128xf32>
    %283 = vector.extract_strided_slice %282 {offsets = [0, 0], sizes = [8, 32], strides = [1, 1]} : vector<8x128xf32> to vector<8x32xf32>
    %284 = vector.extract_strided_slice %282 {offsets = [0, 32], sizes = [8, 32], strides = [1, 1]} : vector<8x128xf32> to vector<8x32xf32>
    %285 = vector.extract_strided_slice %282 {offsets = [0, 64], sizes = [8, 32], strides = [1, 1]} : vector<8x128xf32> to vector<8x32xf32>
    %286 = vector.extract_strided_slice %282 {offsets = [0, 96], sizes = [8, 32], strides = [1, 1]} : vector<8x128xf32> to vector<8x32xf32>
    %287 = arith.mulf %284, %250 : vector<8x32xf32>
    %288 = arith.mulf %283, %285 : vector<8x32xf32>
    %289 = arith.addf %287, %288 : vector<8x32xf32>
    %290 = math.tanh %289 : vector<8x32xf32>
    %291 = arith.mulf %286, %290 : vector<8x32xf32>
    %cst_49 = arith.constant dense<0.000000e+00> : vector<8x128xf32>
    %292 = tpu.matmul %272, %6, %cst_49 {dimension_numbers = #tpu.dot_dimension_numbers<[1], [0], [0], [1], [0, 0, 1, 1], [], []>} : vector<8x32xf32>, vector<32x128xf32>, vector<8x128xf32> -> vector<8x128xf32>
    %cst_50 = arith.constant dense<0.000000e+00> : vector<8x128xf32>
    %293 = tpu.matmul %291, %8, %cst_50 {dimension_numbers = #tpu.dot_dimension_numbers<[1], [0], [0], [1], [0, 0, 1, 1], [], []>} : vector<8x32xf32>, vector<32x128xf32>, vector<8x128xf32> -> vector<8x128xf32>
    %294 = vector.extract_strided_slice %5 {offsets = [56, 0], sizes = [8, 128], strides = [1, 1]} : vector<64x128xf32> to vector<8x128xf32>
    %295 = arith.addf %294, %292 : vector<8x128xf32>
    %296 = math.tanh %295 : vector<8x128xf32>
    %297 = arith.negf %295 : vector<8x128xf32>
    %298 = math.exp %297 : vector<8x128xf32>
    %cst_51 = arith.constant 1.000000e+00 : f32
    %299 = vector.broadcast %cst_51 : f32 to vector<8x128xf32>
    %300 = arith.addf %299, %298 : vector<8x128xf32>
    %301 = arith.divf %299, %300 : vector<8x128xf32>
    %302 = arith.select %17, %296, %301 : vector<8x128xi1>, vector<8x128xf32>
    %303 = vector.extract_strided_slice %302 {offsets = [0, 0], sizes = [8, 32], strides = [1, 1]} : vector<8x128xf32> to vector<8x32xf32>
    %304 = vector.extract_strided_slice %302 {offsets = [0, 32], sizes = [8, 32], strides = [1, 1]} : vector<8x128xf32> to vector<8x32xf32>
    %305 = vector.extract_strided_slice %302 {offsets = [0, 64], sizes = [8, 32], strides = [1, 1]} : vector<8x128xf32> to vector<8x32xf32>
    %306 = vector.extract_strided_slice %302 {offsets = [0, 96], sizes = [8, 32], strides = [1, 1]} : vector<8x128xf32> to vector<8x32xf32>
    %307 = arith.mulf %304, %270 : vector<8x32xf32>
    %308 = arith.mulf %303, %305 : vector<8x32xf32>
    %309 = arith.addf %307, %308 : vector<8x32xf32>
    %310 = math.tanh %309 : vector<8x32xf32>
    %311 = arith.mulf %306, %310 : vector<8x32xf32>
    %cst_52 = arith.constant dense<0.000000e+00> : vector<8x128xf32>
    %312 = tpu.matmul %311, %7, %cst_52 {dimension_numbers = #tpu.dot_dimension_numbers<[1], [0], [0], [1], [0, 0, 1, 1], [], []>} : vector<8x32xf32>, vector<32x128xf32>, vector<8x128xf32> -> vector<8x128xf32>
    %313 = arith.addf %312, %293 : vector<8x128xf32>
    %314 = arith.addf %313, %11 : vector<8x128xf32>
    %315 = math.tanh %314 : vector<8x128xf32>
    %316 = arith.negf %314 : vector<8x128xf32>
    %317 = math.exp %316 : vector<8x128xf32>
    %cst_53 = arith.constant 1.000000e+00 : f32
    %318 = vector.broadcast %cst_53 : f32 to vector<8x128xf32>
    %319 = arith.addf %318, %317 : vector<8x128xf32>
    %320 = arith.divf %318, %319 : vector<8x128xf32>
    %321 = arith.select %17, %315, %320 : vector<8x128xi1>, vector<8x128xf32>
    %322 = vector.extract_strided_slice %321 {offsets = [0, 0], sizes = [8, 32], strides = [1, 1]} : vector<8x128xf32> to vector<8x32xf32>
    %323 = vector.extract_strided_slice %321 {offsets = [0, 32], sizes = [8, 32], strides = [1, 1]} : vector<8x128xf32> to vector<8x32xf32>
    %324 = vector.extract_strided_slice %321 {offsets = [0, 64], sizes = [8, 32], strides = [1, 1]} : vector<8x128xf32> to vector<8x32xf32>
    %325 = vector.extract_strided_slice %321 {offsets = [0, 96], sizes = [8, 32], strides = [1, 1]} : vector<8x128xf32> to vector<8x32xf32>
    %326 = arith.mulf %323, %289 : vector<8x32xf32>
    %327 = arith.mulf %322, %324 : vector<8x32xf32>
    %328 = arith.addf %326, %327 : vector<8x32xf32>
    %329 = math.tanh %328 : vector<8x32xf32>
    %330 = arith.mulf %325, %329 : vector<8x32xf32>
    %c0_54 = arith.constant 0 : index
    %c0_55 = arith.constant 0 : index
    %331 = vector.load %arg7[%c0_54, %c0_55] : memref<32x8xf32, #tpu.memory_space<vmem>>, vector<32x8xf32>
    %cst_56 = arith.constant dense<0.000000e+00> : vector<8x8xf32>
    %332 = tpu.matmul %330, %331, %cst_56 {dimension_numbers = #tpu.dot_dimension_numbers<[1], [0], [0], [1], [0, 0, 1, 1], [], []>} : vector<8x32xf32>, vector<32x8xf32>, vector<8x8xf32> -> vector<8x8xf32>
    %c0_57 = arith.constant 0 : index
    %c0_58 = arith.constant 0 : index
    %333 = vector.load %arg8[%c0_57, %c0_58] : memref<1x8xf32, #tpu.memory_space<vmem>>, vector<1x8xf32>
    %334 = vector.broadcast %333 : vector<1x8xf32> to vector<8x8xf32>
    %335 = arith.addf %332, %334 : vector<8x8xf32>
    %336 = arith.negf %335 : vector<8x8xf32>
    %337 = math.exp %336 : vector<8x8xf32>
    %cst_59 = arith.constant 1.000000e+00 : f32
    %338 = vector.broadcast %cst_59 : f32 to vector<8x8xf32>
    %339 = arith.addf %338, %337 : vector<8x8xf32>
    %340 = arith.divf %338, %339 : vector<8x8xf32>
    %c0_60 = arith.constant 0 : index
    %c0_61 = arith.constant 0 : index
    %341 = vector.load %arg9[%c0_60, %c0_61] : memref<8x8xf32, #tpu.memory_space<vmem>>, vector<8x8xf32>
    tpu.vector_store %arg9[%c0_60, %c0_61], %340 {strides = array<i32>} : memref<8x8xf32, #tpu.memory_space<vmem>>, vector<8x8xf32>,
    return
  }
}

</mosaic_0001>

<bundles_post_ra>
// kernel: lstm_tagger_forward.1
= control target key start
LH: loop header
LB: loop body
LE: loop exit
PB: predicated region body
PF: predicated region fallthrough
CT: control target
= control target key end

     0   :  { %vm49_vm0 = vcmask 130048   ;;  %v3245_v0 = vmov 0.0|0.0   ;;  %vm3246_vm1 = vmmov 0   ;;  %v3247_v4 = vmov 0.0   ;;  %s3248_s25 = smov 64   ;;  %s3249_s26 = smov 32   ;;  %s3778_s1 = inlined_call_operand.vmem [shape: f32[16,128], index: 1, kind: input, shape index: {}]   ;;  %s3779_s2 = inlined_call_operand.vmem [shape: f32[32,128], index: 2, kind: input, shape index: {}]   ;;  %s3780_s0 = inlined_call_operand.vmem [shape: f32[64,16], index: 0, kind: input, shape index: {}]   ;;  %s3781_s3 = inlined_call_operand.vmem [shape: f32[1,128], index: 3, kind: input, shape index: {}]   ;;  %s3782_s4 = inlined_call_operand.vmem [shape: f32[32,128], index: 4, kind: input, shape index: {}]   ;;  %s3783_s5 = inlined_call_operand.vmem [shape: f32[32,128], index: 5, kind: input, shape index: {}]   ;;  %s3784_s6 = inlined_call_operand.vmem [shape: f32[1,128], index: 6, kind: input, shape index: {}]   ;;  %s3785_s7 = inlined_call_operand.vmem [shape: f32[32,8], index: 7, kind: input, shape index: {}]   ;;  %s3786_s8 = inlined_call_operand.vmem [shape: f32[1,8], index: 8, kind: input, shape index: {}]   ;;  %s3787_s9 = inlined_call_operand.vmem [shape: f32[8,8], index: 9, kind: output, shape index: {}]  }
   0x1   :  { %2957 = vmatprep.subr.bf16.mxu1 %v3245_v0  ;;  %v40_v1 = vld [vmem:[%s3778_s1] sm:$0xff]  ;;  %v41_v2 = vld [vmem:[%s3778_s1 + $0x8] sm:$0xff]  ;;  %2686 = vmatprep.mubr.msk.f32.mxu1 %vm3246_vm1, %v3247_v4  ;;  %v181_v9 = vld [vmem:[%s3779_s2 + $0x10] sm:$0xff]  ;;  %v198_v22 = vlaneseq  ;;  %vm203_vm5 = vcmask 261120   ;;  %vm2470_vm6 = vcmask 64512  }
   0x2   :  { %v179_v3 = vld [vmem:[%s3779_s2] sm:$0xff]  ;;  %v2953_v5 = vpack.c.bf16 %v41_v2, %v40_v1  ;;  %v180_v6 = vld [vmem:[%s3779_s2 + $0x8] sm:$0xff]  ;;  %v182_v10 = vld [vmem:[%s3779_s2 + $0x18] sm:$0xff] }
   0x3   :  { %v32_v7 = vld [vmem:[%s3780_s0] sm:$0xff]  ;;  %v3318_v8 = vpack.c.bf16 %v180_v6, %v179_v3  ;;  %v33_v11 = vld [vmem:[%s3780_s0 + $0x8] sm:$0xff]  ;;  %v3331_v12 = vpack.c.bf16 %v182_v10, %v181_v9  ;;  %v199_v24 = vand.u32 127, %v198_v22  ;;  %v34_v34 = vld [vmem:[%s3780_s0 + $0x10] sm:$0xff] }
   0x4   :  { %2666 = vmatprep.mubr.msk.f32.mxu0 %vm49_vm0, %v32_v7  ;;  %2954 = vmatprep.subr.bf16.mxu0 %v2953_v5  ;;  %v3344_v13 = vld [vmem:[%s3781_s3] ss:$0 sm:$0xff]  ;;  %v35_v35 = vld [vmem:[%s3780_s0 + $0x18] sm:$0xff]  ;;  %v184_v38 = vld [vmem:[%s3782_s4 + $0x8] sm:$0xff] }
   0x5   :  { %2959 = vmatpush3.bf16.msra.mxu1 %v3318_v8  ;;  %2956 = vmatpush3.bf16.msra.mxu0 %v2953_v5  ;;  %vm200_vm2 = vcmp.ge.s32.totalorder %v199_v24, 64  ;;  %vm201_vm3 = vcmp.lt.s32.totalorder %v199_v24, 96  ;;  %v36_v36 = vld [vmem:[%s3780_s0 + $0x20] sm:$0xff]  ;;  %v188_v41 = vld [vmem:[%s3783_s5 + $0x8] sm:$0xff]  ;;  %v189_v42 = vld [vmem:[%s3783_s5 + $0x10] sm:$0xff] }
   0x6   :  { %2960 = vmatprep.subr.bf16.mxu1 %v3245_v0  ;;  %2969 = vmatprep.subr.bf16.mxu0 %v3245_v0  ;;  %vm3349_vm4 = vmand %vm200_vm2, %vm201_vm3  ;;  %v183_v37 = vld [vmem:[%s3782_s4] sm:$0xff]  ;;  %v190_v43 = vld [vmem:[%s3783_s5 + $0x18] sm:$0xff] }
   0x7   :  { %v187_v39 = vld [vmem:[%s3783_s5] sm:$0xff]  ;;  %v3379_v40 = vpack.c.bf16 %v184_v38, %v183_v37  ;;  %v37_v45 = vld [vmem:[%s3780_s0 + $0x28] sm:$0xff]  ;;  %v185_v46 = vld [vmem:[%s3782_s4 + $0x10] sm:$0xff]  ;;  %v3410_v50 = vpack.c.bf16 %v190_v43, %v189_v42 }
   0x8   :  { %2667 = vmatmul.mubr.msk.f32.vlgmr.msra.gmra.mrb[0].mxu0 %vm49_vm0, %v33_v11  ;;  %v3391_v44 = vpack.c.bf16 %v188_v41, %v187_v39  ;;  %v186_v47 = vld [vmem:[%s3782_s4 + $0x18] sm:$0xff]  ;;  %v38_v49 = vld [vmem:[%s3780_s0 + $0x30] sm:$0xff]  ;;  %v3466_v2 = vld [vmem:[%s3784_s6] ss:$0 sm:$0xff] }
   0x9   :  { %2962 = vmatpush3.bf16.msra.mxu1 %v3331_v12  ;;  %2669 = vmatprep.mubr.msk.f32.mxu0 %vm49_vm0, %v34_v34  ;;  %v3404_v48 = vpack.c.bf16 %v186_v47, %v185_v46  ;;  %v39_v51 = vld [vmem:[%s3780_s0 + $0x38] sm:$0xff]  ;;  %v2380_v25 = vld [vmem:[%s3785_s7 + $0x10] sm:$0xff] }
   0xa   :  { %2963 = vmatprep.subr.bf16.mxu1 %v3245_v0  ;;  %2971 = vmatpush3.bf16.msra.mxu0 %v3379_v40 }
   0xb   :  { %2972 = vmatprep.subr.bf16.mxu0 %v3245_v0 }
   0xc   :  { %2687 = vmatmul.mubr.f32.vlgmr.msra.gmra.mrb[0].mxu1 %v3247_v4  ;;  %2670 = vmatmul.mubr.msk.f32.gmra.mrb[2].mxu0 %vm49_vm0, %v35_v35 }
   0xd   :  { %2697 = vmatprep.mubr.msk.f32.mxu1 %vm3246_vm1, %v3247_v4  ;;  %2672 = vmatprep.mubr.msk.f32.mxu0 %vm49_vm0, %v36_v36 }
   0xe   :  { %2965 = vmatpush3.bf16.msra.mxu1 %v3391_v44  ;;  %2974 = vmatpush3.bf16.msra.mxu0 %v3404_v48 }
   0xf   :  { %2966 = vmatprep.subr.bf16.mxu1 %v3245_v0  ;;  %2981 = vmatprep.subr.bf16.mxu0 %v3245_v0 }
  0x10   :  { %2673 = vmatmul.mubr.msk.f32.gmra.mrb[4].mxu0 %vm49_vm0, %v37_v45 }
  0x11   :  { %2675 = vmatprep.mubr.msk.f32.mxu0 %vm49_vm0, %v38_v49 }
  0x12   :  { %2968 = vmatpush3.bf16.msra.mxu1 %v3410_v50 }
  0x13   :  { %2975 = vmatprep.subr.bf16.mxu1 %v3245_v0 }
  0x14   :  { %2676 = vmatmul.mubr.msk.f32.gmra.mrb[6].mxu0 %vm49_vm0, %v39_v51 }
  0x15   :  { %2708 = vmatprep.mubr.msk.f32.mxu0 %vm3246_vm1, %v3247_v4  ;;  %2698 = vmatmul.mubr.f32.vlgmr.msra.gmra.mrb[2].mxu1 %v3247_v4 }
  0x16   :  { %2977 = vmatpush3.bf16.msra.mxu1 %v3318_v8  ;;  %2719 = vmatprep.mubr.msk.f32.mxu1 %vm3246_vm1, %v3247_v4 }
  0x17   :  { %2978 = vmatprep.subr.bf16.mxu1 %v3245_v0 }
  0x1a   :  { %2980 = vmatpush3.bf16.msra.mxu1 %v3331_v12 }
  0x1b   :  { %2987 = vmatprep.subr.bf16.mxu1 %v3245_v0 }
  0xdb   :  { %v3346_v14 = vpop.f32.mrb[0].mxu0 }
  0xdc   :  { %v140_v15 = vpop.f32.mrb[1].mxu0  ;;  %v146_v1 = vadd.f32 %v3346_v14, %v3344_v13 }
  0xdd   :  { %v141_v16 = vadd.f32 %v3344_v13, %v140_v15 }
  0xdf   :  { %v273_v17 = vpop.f32.mrb[0].mxu1  ;;  %v3435_v55 = vpop.f32.mrb[2].mxu0 }
  0xe0   :  { %v347_v18 = vadd.f32 %v273_v17, %v141_v16  ;;  %v2688_v19 = vpop.f32.mrb[1].mxu1  ;;  %v3437_v56 = vpop.f32.mrb[3].mxu0 }
  0xe2   :  { %v2486_v20 = vmul.f32 -1.442695, %v347_v18 }
  0xe3   :  { %v3439_v57 = vpop.f32.mrb[4].mxu0 }
  0xe4   :  { %3112 = vpow2.f32 %v2486_v20  ;;  %v3441_v58 = vpop.f32.mrb[5].mxu0 }
  0xe5   :  { %3114 = vtanh.f32 %v347_v18 }
  0xe7   :  { %v3443_v59 = vpop.f32.mrb[6].mxu0 }
  0xe8   :  { %v3445_v60 = vpop.f32.mrb[7].mxu0  ;;  %v343_v61 = vpop.f32.mrb[2].mxu1 }
  0xe9   :  { %v2699_v62 = vpop.f32.mrb[3].mxu1 }
  0xea   :  { %v151_v62 = vadd.f32 %v3344_v13, %v3437_v56 }
  0xee   :  { %v3113_v21 = vpop.eup %3112 }
  0xef   :  { %v352_v23 = vadd.f32 1.0, %v3113_v21  ;;  %v3115_v26 = vpop.eup %3114 }
  0xf1   :  { %3116 = vrcp.f32 %v352_v23 }
  0xfb   :  { %v3117_v27 = vpop.eup %3116 }
  0xfc   :  { %v355_v28 = vsel %vm3349_vm4, %v3115_v26, %v3117_v27 }
  0xfd   :  { %358 = vrot.lane.b32.xlu0 %v355_v28, %s3248_s25  ;;  %v356_v31 = vmul.f32 0.0, %v355_v28 }
 0x16f   :  { %v359_v29 = vpop.permute.xlu0 %358 }
 0x170   :  { %v361_v30 = vmul.f32 %v359_v29, %v355_v28 }
 0x172   :  { %363 = vrot.lane.b32.xlu0 %v361_v30, %s3249_s26 }
 0x1e4   :  { %v364_v32 = vpop.permute.xlu0 %363 }
 0x1e5   :  { %v3357_v33 = vadd.f32 %v364_v32, %v356_v31 }
 0x1e7   :  { %3118 = vtanh.f32 %v3357_v33 }
 0x1f1   :  { %v3119_v52 = vpop.eup %3118 }
 0x1f2   :  { %369 = vrot.lane.b32.xlu1 %v3119_v52, %s3248_s25 }
 0x264   :  { %v370_v53 = vpop.permute.xlu1 %369 }
 0x265   :  { %v372_v54 = vmul.f32 %v370_v53, %v355_v28 }
 0x267   :  { %374 = vrot.lane.b32.xlu1 %v372_v54, %s3249_s26 }
 0x2d9   :  { %v375_v63 = vpop.permute.xlu1 %374 }
 0x2da   :  { %2709 = vmatmul.mubr.msk.f32.vlgmr.msra.gmra.mrb[8].mxu0 %vm203_vm5, %v375_v63  ;;  %2720 = vmatmul.mubr.msk.f32.vlgmr.msra.gmra.mrb[4].mxu1 %vm203_vm5, %v375_v63 }
 0x2db   :  { %2989 = vmatpush3.bf16.msra.mxu1 %v3379_v40  ;;  %2983 = vmatpush3.bf16.msra.mxu0 %v3391_v44 }
 0x2dc   :  { %2990 = vmatprep.subr.bf16.mxu1 %v3245_v0  ;;  %2984 = vmatprep.subr.bf16.mxu0 %v3245_v0 }
 0x2dd   :  { %2741 = vmatprep.mubr.msk.f32.mxu1 %vm3246_vm1, %v3247_v4  ;;  %2730 = vmatprep.mubr.msk.f32.mxu0 %vm3246_vm1, %v3247_v4 }
 0x2df   :  { %2992 = vmatpush3.bf16.msra.mxu1 %v3404_v48  ;;  %2986 = vmatpush3.bf16.msra.mxu0 %v3410_v50 }
 0x2e0   :  { %2993 = vmatprep.subr.bf16.mxu0 %v3245_v0  ;;  %2999 = vmatprep.subr.bf16.mxu1 %v3245_v0 }
 0x3ad   :  { %v444_v3 = vpop.f32.mrb[8].mxu0  ;;  %v540_v5 = vpop.f32.mrb[4].mxu1 }
 0x3ae   :  { %v445_v6 = vadd.f32 %v444_v3, %v343_v61  ;;  %v619_v7 = vadd.f32 %v540_v5, %v146_v1  ;;  %v2710_v9 = vpop.f32.mrb[9].mxu0  ;;  %v2721_v10 = vpop.f32.mrb[5].mxu1 }
 0x3b0   :  { %v448_v11 = vadd.f32 %v3466_v2, %v445_v6  ;;  %v2491_v15 = vmul.f32 -1.442695, %v619_v7 }
 0x3b2   :  { %v2488_v16 = vmul.f32 -1.442695, %v448_v11  ;;  %3120 = vpow2.f32 %v2491_v15 }
 0x3b4   :  { %3122 = vpow2.f32 %v2488_v16 }
 0x3b5   :  { %3124 = vtanh.f32 %v619_v7 }
 0x3b6   :  { %3126 = vtanh.f32 %v448_v11 }
 0x3bc   :  { %v3121_v17 = vpop.eup %3120 }
 0x3bd   :  { %v624_v14 = vadd.f32 1.0, %v3121_v17 }
 0x3be   :  { %v3123_v18 = vpop.eup %3122 }
 0x3bf   :  { %v453_v19 = vadd.f32 1.0, %v3123_v18  ;;  %3128 = vrcp.f32 %v624_v14  ;;  %v3125_v20 = vpop.eup %3124 }
 0x3c0   :  { %v3127_v21 = vpop.eup %3126 }
 0x3c1   :  { %3130 = vrcp.f32 %v453_v19 }
 0x3c9   :  { %v3129_v22 = vpop.eup %3128 }
 0x3ca   :  { %v627_v24 = vsel %vm3349_vm4, %v3125_v20, %v3129_v22 }
 0x3cb   :  { %v3131_v23 = vpop.eup %3130  ;;  %630 = vrot.lane.b32.xlu1 %v627_v24, %s3248_s25  ;;  %v628_v31 = vmul.f32 %v627_v24, %v3357_v33 }
 0x3cc   :  { %v456_v26 = vsel %vm3349_vm4, %v3127_v21, %v3131_v23 }
 0x3cd   :  { %459 = vrot.lane.b32.xlu0 %v456_v26, %s3248_s25  ;;  %v457_v34 = vmul.f32 0.0, %v456_v26 }
 0x43d   :  { %v631_v27 = vpop.permute.xlu1 %630 }
 0x43e   :  { %v633_v28 = vmul.f32 %v631_v27, %v627_v24 }
 0x43f   :  { %v460_v29 = vpop.permute.xlu0 %459 }
 0x440   :  { %v462_v30 = vmul.f32 %v460_v29, %v456_v26  ;;  %635 = vrot.lane.b32.xlu1 %v633_v28, %s3249_s26 }
 0x442   :  { %464 = vrot.lane.b32.xlu0 %v462_v30, %s3249_s26 }
 0x4b2   :  { %v636_v32 = vpop.permute.xlu1 %635 }
 0x4b3   :  { %v3478_v35 = vadd.f32 %v636_v32, %v628_v31 }
 0x4b4   :  { %v465_v36 = vpop.permute.xlu0 %464 }
 0x4b5   :  { %v3480_v37 = vadd.f32 %v465_v36, %v457_v34  ;;  %3132 = vtanh.f32 %v3478_v35 }
 0x4b7   :  { %3134 = vtanh.f32 %v3480_v37 }
 0x4bf   :  { %v3133_v38 = vpop.eup %3132 }
 0x4c0   :  { %641 = vrot.lane.b32.xlu1 %v3133_v38, %s3248_s25 }
 0x4c1   :  { %v3135_v39 = vpop.eup %3134 }
 0x4c2   :  { %470 = vrot.lane.b32.xlu0 %v3135_v39, %s3248_s25 }
 0x532   :  { %v642_v41 = vpop.permute.xlu1 %641 }
 0x533   :  { %v644_v42 = vmul.f32 %v642_v41, %v627_v24 }
 0x534   :  { %v471_v33 = vpop.permute.xlu0 %470 }
 0x535   :  { %v473_v43 = vmul.f32 %v471_v33, %v456_v26  ;;  %646 = vrot.lane.b32.xlu1 %v644_v42, %s3249_s26  ;;  %v156_v42 = vadd.f32 %v3435_v55, %v3344_v13 }
 0x537   :  { %545 = vrot.lane.b32.xlu0 %v473_v43, %s3249_s26 }
 0x5a7   :  { %v647_v45 = vpop.permute.xlu1 %646 }
 0x5a8   :  { %2742 = vmatmul.mubr.msk.f32.vlgmr.msra.gmra.mrb[6].mxu1 %vm203_vm5, %v647_v45 }
 0x5a9   :  { %v546_v46 = vpop.permute.xlu0 %545  ;;  %3001 = vmatpush3.bf16.msra.mxu1 %v3391_v44  ;;  %2763 = vmatprep.mubr.msk.f32.mxu1 %vm3246_vm1, %v3247_v4 }
 0x5aa   :  { %2731 = vmatmul.mubr.msk.f32.vlgmr.msra.gmra.mrb[10].mxu0 %vm203_vm5, %v546_v46  ;;  %3002 = vmatprep.subr.bf16.mxu1 %v3245_v0 }
 0x5ab   :  { %2995 = vmatpush3.bf16.msra.mxu0 %v3318_v8  ;;  %2752 = vmatprep.mubr.msk.f32.mxu0 %vm3246_vm1, %v3247_v4 }
 0x5ac   :  { %2996 = vmatprep.subr.bf16.mxu0 %v3245_v0 }
 0x5ad   :  { %3004 = vmatpush3.bf16.msra.mxu1 %v3410_v50 }
 0x5ae   :  { %3011 = vmatprep.subr.bf16.mxu1 %v3245_v0 }
 0x5af   :  { %2998 = vmatpush3.bf16.msra.mxu0 %v3331_v12 }
 0x5b0   :  { %3005 = vmatprep.subr.bf16.mxu0 %v3245_v0 }
 0x5b2   :  { %2753 = vmatmul.mubr.msk.f32.vlgmr.msra.gmra.mrb[12].mxu0 %vm203_vm5, %v647_v45 }
 0x5b3   :  { %3007 = vmatpush3.bf16.msra.mxu0 %v3379_v40  ;;  %2774 = vmatprep.mubr.msk.f32.mxu0 %vm3246_vm1, %v3247_v4 }
 0x5b4   :  { %3008 = vmatprep.subr.bf16.mxu0 %v3245_v0 }
 0x5b7   :  { %3010 = vmatpush3.bf16.msra.mxu0 %v3404_v48 }
 0x5b8   :  { %3017 = vmatprep.subr.bf16.mxu0 %v3245_v0 }
 0x67b   :  { %v716_v47 = vpop.f32.mrb[6].mxu1 }
 0x67c   :  { %v2743_v49 = vpop.f32.mrb[7].mxu1 }
 0x67d   :  { %v615_v51 = vpop.f32.mrb[10].mxu0 }
 0x67e   :  { %v717_v52 = vadd.f32 %v716_v47, %v615_v51  ;;  %v2732_v53 = vpop.f32.mrb[11].mxu0 }
 0x680   :  { %v720_v54 = vadd.f32 %v3466_v2, %v717_v52 }
 0x682   :  { %v2493_v61 = vmul.f32 -1.442695, %v720_v54 }
 0x684   :  { %3136 = vpow2.f32 %v2493_v61 }
 0x685   :  { %v812_v63 = vpop.f32.mrb[12].mxu0 }
 0x686   :  { %v891_v1 = vadd.f32 %v812_v63, %v151_v62  ;;  %v2754_v3 = vpop.f32.mrb[13].mxu0 }
 0x688   :  { %v2496_v5 = vmul.f32 -1.442695, %v891_v1 }
 0x68a   :  { %3138 = vpow2.f32 %v2496_v5 }
 0x68b   :  { %3140 = vtanh.f32 %v720_v54 }
 0x68e   :  { %v3137_v6 = vpop.eup %3136 }
 0x68f   :  { %v725_v7 = vadd.f32 1.0, %v3137_v6 }
 0x691   :  { %3142 = vrcp.f32 %v725_v7 }
 0x692   :  { %3144 = vtanh.f32 %v891_v1 }
 0x694   :  { %v3139_v9 = vpop.eup %3138 }
 0x695   :  { %v896_v10 = vadd.f32 1.0, %v3139_v9  ;;  %v3141_v11 = vpop.eup %3140 }
 0x697   :  { %3146 = vrcp.f32 %v896_v10 }
 0x69b   :  { %v3143_v15 = vpop.eup %3142 }
 0x69c   :  { %v728_v16 = vsel %vm3349_vm4, %v3141_v11, %v3143_v15  ;;  %v3145_v56 = vpop.eup %3144 }
 0x69d   :  { %731 = vrot.lane.b32.xlu0 %v728_v16, %s3248_s25  ;;  %v729_v22 = vmul.f32 %v728_v16, %v3480_v37 }
 0x6a1   :  { %v3147_v17 = vpop.eup %3146 }
 0x6a2   :  { %v899_v18 = vsel %vm3349_vm4, %v3145_v56, %v3147_v17 }
 0x6a3   :  { %902 = vrot.lane.b32.xlu1 %v899_v18, %s3248_s25  ;;  %v900_v26 = vmul.f32 %v899_v18, %v3478_v35 }
 0x70f   :  { %v732_v14 = vpop.permute.xlu0 %731 }
 0x710   :  { %v734_v19 = vmul.f32 %v732_v14, %v728_v16 }
 0x712   :  { %736 = vrot.lane.b32.xlu0 %v734_v19, %s3249_s26 }
 0x715   :  { %v903_v20 = vpop.permute.xlu1 %902 }
 0x716   :  { %v905_v21 = vmul.f32 %v903_v20, %v899_v18 }
 0x718   :  { %907 = vrot.lane.b32.xlu1 %v905_v21, %s3249_s26 }
 0x784   :  { %v737_v23 = vpop.permute.xlu0 %736 }
 0x785   :  { %v3521_v24 = vadd.f32 %v737_v23, %v729_v22 }
 0x787   :  { %3148 = vtanh.f32 %v3521_v24 }
 0x78a   :  { %v908_v27 = vpop.permute.xlu1 %907 }
 0x78b   :  { %v3525_v28 = vadd.f32 %v908_v27, %v900_v26 }
 0x78d   :  { %3150 = vtanh.f32 %v3525_v28 }
 0x791   :  { %v3149_v29 = vpop.eup %3148 }
 0x792   :  { %742 = vrot.lane.b32.xlu0 %v3149_v29, %s3248_s25 }
 0x797   :  { %v3151_v30 = vpop.eup %3150 }
 0x798   :  { %913 = vrot.lane.b32.xlu1 %v3151_v30, %s3248_s25 }
 0x804   :  { %v743_v31 = vpop.permute.xlu0 %742 }
 0x805   :  { %v745_v32 = vmul.f32 %v743_v31, %v728_v16 }
 0x807   :  { %817 = vrot.lane.b32.xlu0 %v745_v32, %s3249_s26 }
 0x80a   :  { %v914_v34 = vpop.permute.xlu1 %913 }
 0x80b   :  { %v916_v36 = vmul.f32 %v914_v34, %v899_v18 }
 0x80d   :  { %918 = vrot.lane.b32.xlu1 %v916_v36, %s3249_s26 }
 0x879   :  { %v818_v35 = vpop.permute.xlu0 %817 }
 0x87a   :  { %2764 = vmatmul.mubr.msk.f32.vlgmr.msra.gmra.mrb[8].mxu1 %vm203_vm5, %v818_v35  ;;  %v161_v35 = vadd.f32 %v3344_v13, %v3441_v58 }
 0x87b   :  { %3013 = vmatpush3.bf16.msra.mxu1 %v3318_v8  ;;  %2785 = vmatprep.mubr.msk.f32.mxu1 %vm3246_vm1, %v3247_v4 }
 0x87c   :  { %3014 = vmatprep.subr.bf16.mxu1 %v3245_v0 }
 0x87f   :  { %3016 = vmatpush3.bf16.msra.mxu1 %v3331_v12  ;;  %v919_v37 = vpop.permute.xlu1 %918 }
 0x880   :  { %2775 = vmatmul.mubr.msk.f32.vlgmr.msra.gmra.mrb[14].mxu0 %vm203_vm5, %v919_v37  ;;  %3023 = vmatprep.subr.bf16.mxu1 %v3245_v0 }
 0x881   :  { %3019 = vmatpush3.bf16.msra.mxu0 %v3391_v44  ;;  %2796 = vmatprep.mubr.msk.f32.mxu0 %vm3246_vm1, %v3247_v4 }
 0x882   :  { %2786 = vmatmul.mubr.msk.f32.vlgmr.msra.gmra.mrb[10].mxu1 %vm203_vm5, %v919_v37  ;;  %3020 = vmatprep.subr.bf16.mxu0 %v3245_v0 }
 0x883   :  { %3025 = vmatpush3.bf16.msra.mxu1 %v3379_v40  ;;  %2807 = vmatprep.mubr.msk.f32.mxu1 %vm3246_vm1, %v3247_v4 }
 0x884   :  { %3026 = vmatprep.subr.bf16.mxu1 %v3245_v0 }
 0x885   :  { %3022 = vmatpush3.bf16.msra.mxu0 %v3410_v50 }
 0x886   :  { %3029 = vmatprep.subr.bf16.mxu0 %v3245_v0 }
 0x887   :  { %3028 = vmatpush3.bf16.msra.mxu1 %v3404_v48 }
 0x888   :  { %3035 = vmatprep.subr.bf16.mxu1 %v3245_v0 }
 0x94d   :  { %v887_v38 = vpop.f32.mrb[8].mxu1 }
 0x94e   :  { %v2765_v39 = vpop.f32.mrb[9].mxu1 }
 0x953   :  { %v988_v41 = vpop.f32.mrb[14].mxu0 }
 0x954   :  { %v989_v33 = vadd.f32 %v988_v41, %v887_v38  ;;  %v2776_v43 = vpop.f32.mrb[15].mxu0 }
 0x955   :  { %v1084_v45 = vpop.f32.mrb[10].mxu1 }
 0x956   :  { %v992_v46 = vadd.f32 %v3466_v2, %v989_v33  ;;  %v1163_v47 = vadd.f32 %v1084_v45, %v156_v42  ;;  %v2787_v49 = vpop.f32.mrb[11].mxu1 }
 0x958   :  { %v2498_v51 = vmul.f32 -1.442695, %v992_v46  ;;  %v2501_v52 = vmul.f32 -1.442695, %v1163_v47 }
 0x95a   :  { %3152 = vpow2.f32 %v2498_v51 }
 0x95b   :  { %3154 = vpow2.f32 %v2501_v52 }
 0x95c   :  { %3156 = vtanh.f32 %v992_v46 }
 0x95d   :  { %3158 = vtanh.f32 %v1163_v47 }
 0x964   :  { %v3153_v53 = vpop.eup %3152 }
 0x965   :  { %v3155_v54 = vpop.eup %3154  ;;  %v997_v61 = vadd.f32 1.0, %v3153_v53 }
 0x966   :  { %v1168_v62 = vadd.f32 1.0, %v3155_v54  ;;  %v3157_v55 = vpop.eup %3156 }
 0x967   :  { %3160 = vrcp.f32 %v997_v61  ;;  %v3159_v63 = vpop.eup %3158 }
 0x968   :  { %3162 = vrcp.f32 %v1168_v62 }
 0x971   :  { %v3161_v1 = vpop.eup %3160 }
 0x972   :  { %v3163_v3 = vpop.eup %3162  ;;  %v1000_v5 = vsel %vm3349_vm4, %v3157_v55, %v3161_v1 }
 0x973   :  { %v1171_v6 = vsel %vm3349_vm4, %v3159_v63, %v3163_v3  ;;  %1003 = vrot.lane.b32.xlu0 %v1000_v5, %s3248_s25  ;;  %v1001_v15 = vmul.f32 %v1000_v5, %v3521_v24 }
 0x974   :  { %1174 = vrot.lane.b32.xlu1 %v1171_v6, %s3248_s25  ;;  %v1172_v16 = vmul.f32 %v1171_v6, %v3525_v28 }
 0x9e5   :  { %v1004_v7 = vpop.permute.xlu0 %1003 }
 0x9e6   :  { %v1175_v9 = vpop.permute.xlu1 %1174  ;;  %v1006_v10 = vmul.f32 %v1004_v7, %v1000_v5 }
 0x9e7   :  { %v1177_v11 = vmul.f32 %v1175_v9, %v1171_v6 }
 0x9e8   :  { %1008 = vrot.lane.b32.xlu0 %v1006_v10, %s3249_s26 }
 0x9e9   :  { %1179 = vrot.lane.b32.xlu1 %v1177_v11, %s3249_s26 }
 0xa5a   :  { %v1009_v56 = vpop.permute.xlu0 %1008 }
 0xa5b   :  { %v1180_v17 = vpop.permute.xlu1 %1179  ;;  %v3566_v18 = vadd.f32 %v1009_v56, %v1001_v15 }
 0xa5c   :  { %v3568_v14 = vadd.f32 %v1180_v17, %v1172_v16 }
 0xa5d   :  { %3164 = vtanh.f32 %v3566_v18 }
 0xa5e   :  { %3166 = vtanh.f32 %v3568_v14 }
 0xa67   :  { %v3165_v19 = vpop.eup %3164 }
 0xa68   :  { %v3167_v20 = vpop.eup %3166  ;;  %1014 = vrot.lane.b32.xlu0 %v3165_v19, %s3248_s25 }
 0xa69   :  { %1185 = vrot.lane.b32.xlu1 %v3167_v20, %s3248_s25 }
 0xada   :  { %v1015_v21 = vpop.permute.xlu0 %1014 }
 0xadb   :  { %v1186_v22 = vpop.permute.xlu1 %1185  ;;  %v1017_v23 = vmul.f32 %v1015_v21, %v1000_v5 }
 0xadc   :  { %v1188_v24 = vmul.f32 %v1186_v22, %v1171_v6  ;;  %v166_v22 = vadd.f32 %v3439_v57, %v3344_v13 }
 0xadd   :  { %1089 = vrot.lane.b32.xlu0 %v1017_v23, %s3249_s26 }
 0xade   :  { %1190 = vrot.lane.b32.xlu1 %v1188_v24, %s3249_s26 }
 0xb4f   :  { %v1090_v26 = vpop.permute.xlu0 %1089 }
 0xb50   :  { %v1191_v27 = vpop.permute.xlu1 %1190  ;;  %2797 = vmatmul.mubr.msk.f32.vlgmr.msra.gmra.mrb[16].mxu0 %vm203_vm5, %v1090_v26 }
 0xb51   :  { %2808 = vmatmul.mubr.msk.f32.vlgmr.msra.gmra.mrb[12].mxu1 %vm203_vm5, %v1191_v27  ;;  %3031 = vmatpush3.bf16.msra.mxu0 %v3318_v8 }
 0xb52   :  { %3032 = vmatprep.subr.bf16.mxu0 %v3245_v0  ;;  %2818 = vmatprep.mubr.msk.f32.mxu0 %vm3246_vm1, %v3247_v4 }
 0xb53   :  { %3037 = vmatpush3.bf16.msra.mxu1 %v3391_v44  ;;  %2829 = vmatprep.mubr.msk.f32.mxu1 %vm3246_vm1, %v3247_v4 }
 0xb54   :  { %3038 = vmatprep.subr.bf16.mxu1 %v3245_v0 }
 0xb55   :  { %3034 = vmatpush3.bf16.msra.mxu0 %v3331_v12 }
 0xb56   :  { %3041 = vmatprep.subr.bf16.mxu0 %v3245_v0 }
 0xb57   :  { %3040 = vmatpush3.bf16.msra.mxu1 %v3410_v50 }
 0xb58   :  { %2819 = vmatmul.mubr.msk.f32.vlgmr.msra.gmra.mrb[18].mxu0 %vm203_vm5, %v1191_v27  ;;  %3047 = vmatprep.subr.bf16.mxu1 %v3245_v0 }
 0xb59   :  { %3043 = vmatpush3.bf16.msra.mxu0 %v3379_v40  ;;  %2840 = vmatprep.mubr.msk.f32.mxu0 %vm3246_vm1, %v3247_v4 }
 0xb5a   :  { %3044 = vmatprep.subr.bf16.mxu0 %v3245_v0 }
 0xb5d   :  { %3046 = vmatpush3.bf16.msra.mxu0 %v3404_v48 }
 0xb5e   :  { %3053 = vmatprep.subr.bf16.mxu0 %v3245_v0 }
 0xc23   :  { %v1159_v28 = vpop.f32.mrb[16].mxu0 }
 0xc24   :  { %v1260_v29 = vpop.f32.mrb[12].mxu1  ;;  %v2798_v30 = vpop.f32.mrb[17].mxu0 }
 0xc25   :  { %v1261_v31 = vadd.f32 %v1260_v29, %v1159_v28  ;;  %v2809_v32 = vpop.f32.mrb[13].mxu1 }
 0xc27   :  { %v1264_v34 = vadd.f32 %v3466_v2, %v1261_v31 }
 0xc29   :  { %v2503_v36 = vmul.f32 -1.442695, %v1264_v34 }
 0xc2b   :  { %3168 = vpow2.f32 %v2503_v36  ;;  %v1356_v37 = vpop.f32.mrb[18].mxu0 }
 0xc2c   :  { %v1435_v38 = vadd.f32 %v1356_v37, %v161_v35  ;;  %v2820_v39 = vpop.f32.mrb[19].mxu0 }
 0xc2e   :  { %v2506_v41 = vmul.f32 -1.442695, %v1435_v38 }
 0xc30   :  { %3170 = vpow2.f32 %v2506_v41 }
 0xc31   :  { %3172 = vtanh.f32 %v1264_v34 }
 0xc35   :  { %v3169_v42 = vpop.eup %3168 }
 0xc36   :  { %v1269_v33 = vadd.f32 1.0, %v3169_v42 }
 0xc38   :  { %3174 = vrcp.f32 %v1269_v33 }
 0xc39   :  { %3176 = vtanh.f32 %v1435_v38 }
 0xc3a   :  { %v3171_v43 = vpop.eup %3170 }
 0xc3b   :  { %v1440_v45 = vadd.f32 1.0, %v3171_v43  ;;  %v3173_v46 = vpop.eup %3172 }
 0xc3d   :  { %3178 = vrcp.f32 %v1440_v45 }
 0xc42   :  { %v3175_v47 = vpop.eup %3174 }
 0xc43   :  { %v1272_v49 = vsel %vm3349_vm4, %v3173_v46, %v3175_v47  ;;  %v3177_v58 = vpop.eup %3176 }
 0xc44   :  { %1275 = vrot.lane.b32.xlu0 %v1272_v49, %s3248_s25  ;;  %v1273_v55 = vmul.f32 %v1272_v49, %v3566_v18 }
 0xc47   :  { %v3179_v51 = vpop.eup %3178 }
 0xc48   :  { %v1443_v52 = vsel %vm3349_vm4, %v3177_v58, %v3179_v51 }
 0xc49   :  { %1446 = vrot.lane.b32.xlu1 %v1443_v52, %s3248_s25  ;;  %v1444_v3 = vmul.f32 %v1443_v52, %v3568_v14 }
 0xcb6   :  { %v1276_v53 = vpop.permute.xlu0 %1275 }
 0xcb7   :  { %v1278_v54 = vmul.f32 %v1276_v53, %v1272_v49 }
 0xcb9   :  { %1280 = vrot.lane.b32.xlu0 %v1278_v54, %s3249_s26 }
 0xcbb   :  { %v1447_v61 = vpop.permute.xlu1 %1446 }
 0xcbc   :  { %v1449_v62 = vmul.f32 %v1447_v61, %v1443_v52 }
 0xcbe   :  { %1451 = vrot.lane.b32.xlu1 %v1449_v62, %s3249_s26 }
 0xd2b   :  { %v1281_v63 = vpop.permute.xlu0 %1280 }
 0xd2c   :  { %v3609_v1 = vadd.f32 %v1281_v63, %v1273_v55 }
 0xd2e   :  { %3180 = vtanh.f32 %v3609_v1 }
 0xd30   :  { %v1452_v5 = vpop.permute.xlu1 %1451 }
 0xd31   :  { %v3613_v6 = vadd.f32 %v1452_v5, %v1444_v3 }
 0xd33   :  { %3182 = vtanh.f32 %v3613_v6 }
 0xd38   :  { %v3181_v7 = vpop.eup %3180 }
 0xd39   :  { %1286 = vrot.lane.b32.xlu0 %v3181_v7, %s3248_s25 }
 0xd3d   :  { %v3183_v9 = vpop.eup %3182 }
 0xd3e   :  { %1457 = vrot.lane.b32.xlu1 %v3183_v9, %s3248_s25 }
 0xdab   :  { %v1287_v10 = vpop.permute.xlu0 %1286 }
 0xdac   :  { %v1289_v11 = vmul.f32 %v1287_v10, %v1272_v49 }
 0xdae   :  { %1361 = vrot.lane.b32.xlu0 %v1289_v11, %s3249_s26 }
 0xdb0   :  { %v1458_v15 = vpop.permute.xlu1 %1457 }
 0xdb1   :  { %v1460_v16 = vmul.f32 %v1458_v15, %v1443_v52  ;;  %v171_v15 = vadd.f32 %v3344_v13, %v3445_v60 }
 0xdb3   :  { %1462 = vrot.lane.b32.xlu1 %v1460_v16, %s3249_s26 }
 0xe20   :  { %v1362_v56 = vpop.permute.xlu0 %1361 }
 0xe21   :  { %2830 = vmatmul.mubr.msk.f32.vlgmr.msra.gmra.mrb[14].mxu1 %vm203_vm5, %v1362_v56 }
 0xe22   :  { %3049 = vmatpush3.bf16.msra.mxu1 %v3318_v8  ;;  %2851 = vmatprep.mubr.msk.f32.mxu1 %vm3246_vm1, %v3247_v4 }
 0xe23   :  { %3050 = vmatprep.subr.bf16.mxu1 %v3245_v0 }
 0xe25   :  { %v1463_v17 = vpop.permute.xlu1 %1462 }
 0xe26   :  { %3052 = vmatpush3.bf16.msra.mxu1 %v3331_v12  ;;  %2841 = vmatmul.mubr.msk.f32.vlgmr.msra.gmra.mrb[20].mxu0 %vm203_vm5, %v1463_v17 }
 0xe27   :  { %3055 = vmatpush3.bf16.msra.mxu0 %v3391_v44  ;;  %3059 = vmatprep.subr.bf16.mxu1 %v3245_v0 }
 0xe28   :  { %3056 = vmatprep.subr.bf16.mxu0 %v3245_v0  ;;  %2862 = vmatprep.mubr.msk.f32.mxu0 %vm3246_vm1, %v3247_v4 }
 0xe29   :  { %2852 = vmatmul.mubr.msk.f32.vlgmr.msra.gmra.mrb[16].mxu1 %vm203_vm5, %v1463_v17 }
 0xe2a   :  { %3061 = vmatpush3.bf16.msra.mxu1 %v3379_v40  ;;  %2873 = vmatprep.mubr.msk.f32.mxu1 %vm3246_vm1, %v3247_v4 }
 0xe2b   :  { %3058 = vmatpush3.bf16.msra.mxu0 %v3410_v50  ;;  %3062 = vmatprep.subr.bf16.mxu1 %v3245_v0 }
 0xe2c   :  { %3065 = vmatprep.subr.bf16.mxu0 %v3245_v0 }
 0xe2e   :  { %3064 = vmatpush3.bf16.msra.mxu1 %v3404_v48 }
 0xe2f   :  { %3071 = vmatprep.subr.bf16.mxu1 %v3245_v0 }
 0xef4   :  { %v1431_v18 = vpop.f32.mrb[14].mxu1 }
 0xef5   :  { %v2831_v14 = vpop.f32.mrb[15].mxu1 }
 0xef9   :  { %v1532_v19 = vpop.f32.mrb[20].mxu0 }
 0xefa   :  { %v1533_v20 = vadd.f32 %v1532_v19, %v1431_v18  ;;  %v2842_v21 = vpop.f32.mrb[21].mxu0 }
 0xefc   :  { %v1536_v23 = vadd.f32 %v3466_v2, %v1533_v20  ;;  %v1628_v24 = vpop.f32.mrb[16].mxu1 }
 0xefd   :  { %v1707_v26 = vadd.f32 %v1628_v24, %v166_v22  ;;  %v2853_v27 = vpop.f32.mrb[17].mxu1 }
 0xefe   :  { %v2508_v28 = vmul.f32 -1.442695, %v1536_v23 }
 0xeff   :  { %v2511_v29 = vmul.f32 -1.442695, %v1707_v26 }
 0xf00   :  { %3184 = vpow2.f32 %v2508_v28 }
 0xf01   :  { %3186 = vpow2.f32 %v2511_v29 }
 0xf02   :  { %3188 = vtanh.f32 %v1536_v23 }
 0xf03   :  { %3190 = vtanh.f32 %v1707_v26 }
 0xf0a   :  { %v3185_v30 = vpop.eup %3184 }
 0xf0b   :  { %v3187_v31 = vpop.eup %3186  ;;  %v1541_v32 = vadd.f32 1.0, %v3185_v30 }
 0xf0c   :  { %v1712_v34 = vadd.f32 1.0, %v3187_v31  ;;  %v3189_v36 = vpop.eup %3188 }
 0xf0d   :  { %3192 = vrcp.f32 %v1541_v32  ;;  %v3191_v35 = vpop.eup %3190 }
 0xf0e   :  { %3194 = vrcp.f32 %v1712_v34 }
 0xf17   :  { %v3193_v57 = vpop.eup %3192 }
 0xf18   :  { %v3195_v37 = vpop.eup %3194  ;;  %v1544_v38 = vsel %vm3349_vm4, %v3189_v36, %v3193_v57 }
 0xf19   :  { %v1715_v39 = vsel %vm3349_vm4, %v3191_v35, %v3195_v37  ;;  %1547 = vrot.lane.b32.xlu0 %v1544_v38, %s3248_s25  ;;  %v1545_v45 = vmul.f32 %v1544_v38, %v3609_v1 }
 0xf1a   :  { %1718 = vrot.lane.b32.xlu1 %v1715_v39, %s3248_s25  ;;  %v1716_v46 = vmul.f32 %v1715_v39, %v3613_v6 }
 0xf8b   :  { %v1548_v41 = vpop.permute.xlu0 %1547 }
 0xf8c   :  { %v1719_v42 = vpop.permute.xlu1 %1718  ;;  %v1550_v33 = vmul.f32 %v1548_v41, %v1544_v38 }
 0xf8d   :  { %v1721_v43 = vmul.f32 %v1719_v42, %v1715_v39 }
 0xf8e   :  { %1552 = vrot.lane.b32.xlu0 %v1550_v33, %s3249_s26 }
 0xf8f   :  { %1723 = vrot.lane.b32.xlu1 %v1721_v43, %s3249_s26 }
0x1000   :  { %v1553_v47 = vpop.permute.xlu0 %1552 }
0x1001   :  { %v1724_v49 = vpop.permute.xlu1 %1723  ;;  %v3654_v58 = vadd.f32 %v1553_v47, %v1545_v45 }
0x1002   :  { %v3656_v51 = vadd.f32 %v1724_v49, %v1716_v46 }
0x1003   :  { %3196 = vtanh.f32 %v3654_v58 }
0x1004   :  { %3198 = vtanh.f32 %v3656_v51 }
0x100d   :  { %v3197_v52 = vpop.eup %3196 }
0x100e   :  { %v3199_v53 = vpop.eup %3198  ;;  %1558 = vrot.lane.b32.xlu0 %v3197_v52, %s3248_s25 }
0x100f   :  { %1729 = vrot.lane.b32.xlu1 %v3199_v53, %s3248_s25 }
0x1080   :  { %v1559_v54 = vpop.permute.xlu0 %1558 }
0x1081   :  { %v1730_v61 = vpop.permute.xlu1 %1729  ;;  %v1561_v62 = vmul.f32 %v1559_v54, %v1544_v38 }
0x1082   :  { %v1732_v55 = vmul.f32 %v1730_v61, %v1715_v39 }
0x1083   :  { %1633 = vrot.lane.b32.xlu0 %v1561_v62, %s3249_s26 }
0x1084   :  { %1734 = vrot.lane.b32.xlu1 %v1732_v55, %s3249_s26 }
0x10f5   :  { %v1634_v63 = vpop.permute.xlu0 %1633 }
0x10f6   :  { %v1735_v1 = vpop.permute.xlu1 %1734  ;;  %2863 = vmatmul.mubr.msk.f32.vlgmr.msra.gmra.mrb[22].mxu0 %vm203_vm5, %v1634_v63 }
0x10f7   :  { %2874 = vmatmul.mubr.msk.f32.vlgmr.msra.gmra.mrb[18].mxu1 %vm203_vm5, %v1735_v1  ;;  %3067 = vmatpush3.bf16.msra.mxu0 %v3318_v8 }
0x10f8   :  { %3068 = vmatprep.subr.bf16.mxu0 %v3245_v0  ;;  %2884 = vmatprep.mubr.msk.f32.mxu0 %vm3246_vm1, %v3247_v4 }
0x10f9   :  { %3073 = vmatpush3.bf16.msra.mxu1 %v3391_v44  ;;  %2895 = vmatprep.mubr.msk.f32.mxu1 %vm3246_vm1, %v3247_v4 }
0x10fa   :  { %3074 = vmatprep.subr.bf16.mxu1 %v3245_v0 }
0x10fb   :  { %3070 = vmatpush3.bf16.msra.mxu0 %v3331_v12 }
0x10fc   :  { %3077 = vmatprep.subr.bf16.mxu0 %v3245_v0 }
0x10fd   :  { %3076 = vmatpush3.bf16.msra.mxu1 %v3410_v50 }
0x10fe   :  { %2885 = vmatmul.mubr.msk.f32.vlgmr.msra.gmra.mrb[24].mxu0 %vm203_vm5, %v1735_v1  ;;  %3083 = vmatprep.subr.bf16.mxu1 %v3245_v0 }
0x10ff   :  { %3079 = vmatpush3.bf16.msra.mxu0 %v3379_v40  ;;  %2906 = vmatprep.mubr.msk.f32.mxu0 %vm3246_vm1, %v3247_v4 }
0x1100   :  { %3080 = vmatprep.subr.bf16.mxu0 %v3245_v0 }
0x1103   :  { %3082 = vmatpush3.bf16.msra.mxu0 %v3404_v48 }
0x1104   :  { %3089 = vmatprep.subr.bf16.mxu0 %v3245_v0 }
0x11c9   :  { %v1703_v3 = vpop.f32.mrb[22].mxu0 }
0x11ca   :  { %v1804_v5 = vpop.f32.mrb[18].mxu1  ;;  %v2864_v6 = vpop.f32.mrb[23].mxu0 }
0x11cb   :  { %v1805_v7 = vadd.f32 %v1804_v5, %v1703_v3  ;;  %v2875_v9 = vpop.f32.mrb[19].mxu1 }
0x11cd   :  { %v1808_v10 = vadd.f32 %v3466_v2, %v1805_v7 }
0x11cf   :  { %v2513_v11 = vmul.f32 -1.442695, %v1808_v10 }
0x11d1   :  { %3200 = vpow2.f32 %v2513_v11  ;;  %v1900_v16 = vpop.f32.mrb[24].mxu0 }
0x11d2   :  { %v1979_v56 = vadd.f32 %v1900_v16, %v171_v15  ;;  %v2886_v17 = vpop.f32.mrb[25].mxu0 }
0x11d4   :  { %v2516_v18 = vmul.f32 -1.442695, %v1979_v56 }
0x11d6   :  { %3202 = vpow2.f32 %v2516_v18 }
0x11d7   :  { %3204 = vtanh.f32 %v1808_v10 }
0x11db   :  { %v3201_v14 = vpop.eup %3200 }
0x11dc   :  { %v1813_v19 = vadd.f32 1.0, %v3201_v14 }
0x11de   :  { %3206 = vrcp.f32 %v1813_v19 }
0x11df   :  { %3208 = vtanh.f32 %v1979_v56 }
0x11e0   :  { %v3203_v20 = vpop.eup %3202 }
0x11e1   :  { %v1984_v21 = vadd.f32 1.0, %v3203_v20  ;;  %v3205_v22 = vpop.eup %3204 }
0x11e3   :  { %3210 = vrcp.f32 %v1984_v21 }
0x11e8   :  { %v3207_v23 = vpop.eup %3206 }
0x11e9   :  { %v1816_v24 = vsel %vm3349_vm4, %v3205_v22, %v3207_v23  ;;  %v3209_v13 = vpop.eup %3208 }
0x11ea   :  { %1819 = vrot.lane.b32.xlu0 %v1816_v24, %s3248_s25  ;;  %v1817_v31 = vmul.f32 %v1816_v24, %v3654_v58 }
0x11ed   :  { %v3211_v60 = vpop.eup %3210 }
0x11ee   :  { %v1987_v26 = vsel %vm3349_vm4, %v3209_v13, %v3211_v60 }
0x11ef   :  { %1990 = vrot.lane.b32.xlu1 %v1987_v26, %s3248_s25  ;;  %v1988_v36 = vmul.f32 %v1987_v26, %v3656_v51 }
0x125c   :  { %v1820_v27 = vpop.permute.xlu0 %1819 }
0x125d   :  { %v1822_v28 = vmul.f32 %v1820_v27, %v1816_v24 }
0x125f   :  { %1824 = vrot.lane.b32.xlu0 %v1822_v28, %s3249_s26 }
0x1261   :  { %v1991_v29 = vpop.permute.xlu1 %1990 }
0x1262   :  { %v1993_v30 = vmul.f32 %v1991_v29, %v1987_v26 }
0x1264   :  { %1995 = vrot.lane.b32.xlu1 %v1993_v30, %s3249_s26 }
0x12d1   :  { %v1825_v32 = vpop.permute.xlu0 %1824 }
0x12d2   :  { %v3697_v34 = vadd.f32 %v1825_v32, %v1817_v31 }
0x12d4   :  { %3212 = vtanh.f32 %v3697_v34 }
0x12d6   :  { %v1996_v35 = vpop.permute.xlu1 %1995 }
0x12d7   :  { %v3701_v57 = vadd.f32 %v1996_v35, %v1988_v36 }
0x12d9   :  { %3214 = vtanh.f32 %v3701_v57 }
0x12de   :  { %v3213_v37 = vpop.eup %3212 }
0x12df   :  { %1830 = vrot.lane.b32.xlu0 %v3213_v37, %s3248_s25 }
0x12e3   :  { %v3215_v38 = vpop.eup %3214 }
0x12e4   :  { %2001 = vrot.lane.b32.xlu1 %v3215_v38, %s3248_s25 }
0x1351   :  { %v1831_v39 = vpop.permute.xlu0 %1830 }
0x1352   :  { %v1833_v41 = vmul.f32 %v1831_v39, %v1816_v24 }
0x1354   :  { %1905 = vrot.lane.b32.xlu0 %v1833_v41, %s3249_s26 }
0x1356   :  { %v2002_v42 = vpop.permute.xlu1 %2001 }
0x1357   :  { %v2004_v33 = vmul.f32 %v2002_v42, %v1987_v26  ;;  %v2378_v42 = vld [vmem:[%s3785_s7] sm:$0xff] }
0x1359   :  { %2006 = vrot.lane.b32.xlu1 %v2004_v33, %s3249_s26  ;;  %v2379_v33 = vld [vmem:[%s3785_s7 + $0x8] sm:$0xff] }
0x13c6   :  { %v1906_v43 = vpop.permute.xlu0 %1905 }
0x13c7   :  { %2896 = vmatmul.mubr.msk.f32.vlgmr.msra.gmra.mrb[20].mxu1 %vm203_vm5, %v1906_v43  ;;  %v3102_v43 = vpack.c.bf16 %v2379_v33, %v2378_v42 }
0x13c8   :  { %3085 = vmatpush3.bf16.msra.mxu1 %v3318_v8  ;;  %2917 = vmatprep.mubr.msk.f32.mxu1 %vm3246_vm1, %v3247_v4 }
0x13c9   :  { %3086 = vmatprep.subr.bf16.mxu1 %v3245_v0 }
0x13cb   :  { %v2007_v45 = vpop.permute.xlu1 %2006 }
0x13cc   :  { %3088 = vmatpush3.bf16.msra.mxu1 %v3331_v12  ;;  %2907 = vmatmul.mubr.msk.f32.vlgmr.msra.gmra.mrb[26].mxu0 %vm203_vm5, %v2007_v45 }
0x13cd   :  { %3095 = vmatprep.subr.bf16.mxu1 %v3245_v0  ;;  %3091 = vmatpush3.bf16.msra.mxu0 %v3391_v44 }
0x13ce   :  { %3092 = vmatprep.subr.bf16.mxu0 %v3245_v0  ;;  %2928 = vmatprep.mubr.msk.f32.mxu0 %vm3246_vm1, %v3247_v4 }
0x13cf   :  { %2918 = vmatmul.mubr.msk.f32.vlgmr.msra.gmra.mrb[22].mxu1 %vm203_vm5, %v2007_v45  ;;  %v2381_v45 = vld [vmem:[%s3785_s7 + $0x18] sm:$0xff] }
0x13d0   :  { %3097 = vmatpush3.bf16.msra.mxu1 %v3379_v40  ;;  %2939 = vmatprep.mubr.msk.f32.mxu1 %vm3246_vm1, %v3247_v4  ;;  %v3244_v40 = vld [vmem:[%s3781_s3] ss:$0 sm:$0xff] }
0x13d1   :  { %3098 = vmatprep.subr.bf16.mxu1 %v3245_v0  ;;  %3094 = vmatpush3.bf16.msra.mxu0 %v3410_v50  ;;  %v176_v49 = vadd.f32 %v3244_v40, %v3443_v59  ;;  %v2524_v40 = vld [vmem:[%s3786_s8] ss:$0 sm:$0xff] }
0x13d2   :  { %3101 = vmatprep.subr.bf16.mxu0 %v3245_v0 }
0x13d4   :  { %3100 = vmatpush3.bf16.msra.mxu1 %v3404_v48 }
0x149a   :  { %v1975_v8 = vpop.f32.mrb[20].mxu1 }
0x149b   :  { %v2897_v12 = vpop.f32.mrb[21].mxu1 }
0x149f   :  { %v2076_v44 = vpop.f32.mrb[26].mxu0 }
0x14a0   :  { %v2077_v46 = vadd.f32 %v2076_v44, %v1975_v8  ;;  %v2908_v47 = vpop.f32.mrb[27].mxu0  ;;  %v3105_v8 = vpack.c.bf16 %v2381_v45, %v2380_v25 }
0x14a2   :  { %v2080_v58 = vadd.f32 %v3466_v2, %v2077_v46  ;;  %v2172_v51 = vpop.f32.mrb[22].mxu1 }
0x14a3   :  { %v2251_v52 = vadd.f32 %v2172_v51, %v176_v49  ;;  %v2919_v50 = vpop.f32.mrb[23].mxu1 }
0x14a4   :  { %v2518_v53 = vmul.f32 -1.442695, %v2080_v58 }
0x14a5   :  { %v2521_v54 = vmul.f32 -1.442695, %v2251_v52 }
0x14a6   :  { %3216 = vpow2.f32 %v2518_v53 }
0x14a7   :  { %3218 = vpow2.f32 %v2521_v54 }
0x14a8   :  { %3220 = vtanh.f32 %v2080_v58 }
0x14a9   :  { %3222 = vtanh.f32 %v2251_v52 }
0x14b0   :  { %v3217_v48 = vpop.eup %3216 }
0x14b1   :  { %v3219_v61 = vpop.eup %3218  ;;  %v2085_v62 = vadd.f32 1.0, %v3217_v48 }
0x14b2   :  { %v2256_v55 = vadd.f32 1.0, %v3219_v61  ;;  %v3221_v63 = vpop.eup %3220 }
0x14b3   :  { %3224 = vrcp.f32 %v2085_v62  ;;  %v3223_v1 = vpop.eup %3222 }
0x14b4   :  { %3226 = vrcp.f32 %v2256_v55 }
0x14bd   :  { %v3225_v59 = vpop.eup %3224 }
0x14be   :  { %v3227_v3 = vpop.eup %3226  ;;  %v2088_v5 = vsel %vm3349_vm4, %v3221_v63, %v3225_v59 }
0x14bf   :  { %v2259_v6 = vsel %vm3349_vm4, %v3223_v1, %v3227_v3  ;;  %2091 = vrot.lane.b32.xlu0 %v2088_v5, %s3248_s25  ;;  %v2089_v15 = vmul.f32 %v2088_v5, %v3697_v34 }
0x14c0   :  { %2262 = vrot.lane.b32.xlu1 %v2259_v6, %s3248_s25  ;;  %v2260_v16 = vmul.f32 %v2259_v6, %v3701_v57 }
0x1531   :  { %v2092_v7 = vpop.permute.xlu0 %2091 }
0x1532   :  { %v2263_v9 = vpop.permute.xlu1 %2262  ;;  %v2094_v10 = vmul.f32 %v2092_v7, %v2088_v5 }
0x1533   :  { %v2265_v11 = vmul.f32 %v2263_v9, %v2259_v6 }
0x1534   :  { %2096 = vrot.lane.b32.xlu0 %v2094_v10, %s3249_s26 }
0x1535   :  { %2267 = vrot.lane.b32.xlu1 %v2265_v11, %s3249_s26 }
0x15a6   :  { %v2097_v56 = vpop.permute.xlu0 %2096 }
0x15a7   :  { %v2268_v17 = vpop.permute.xlu1 %2267  ;;  %v2099_v18 = vadd.f32 %v2097_v56, %v2089_v15 }
0x15a8   :  { %v2270_v14 = vadd.f32 %v2268_v17, %v2260_v16 }
0x15a9   :  { %3228 = vtanh.f32 %v2099_v18 }
0x15aa   :  { %3230 = vtanh.f32 %v2270_v14 }
0x15b3   :  { %v3229_v19 = vpop.eup %3228 }
0x15b4   :  { %v3231_v20 = vpop.eup %3230  ;;  %2102 = vrot.lane.b32.xlu0 %v3229_v19, %s3248_s25 }
0x15b5   :  { %2273 = vrot.lane.b32.xlu1 %v3231_v20, %s3248_s25 }
0x1626   :  { %v2103_v21 = vpop.permute.xlu0 %2102 }
0x1627   :  { %v2274_v22 = vpop.permute.xlu1 %2273  ;;  %v2105_v23 = vmul.f32 %v2103_v21, %v2088_v5 }
0x1628   :  { %v2276_v24 = vmul.f32 %v2274_v22, %v2259_v6 }
0x1629   :  { %2177 = vrot.lane.b32.xlu0 %v2105_v23, %s3249_s26 }
0x162a   :  { %2278 = vrot.lane.b32.xlu1 %v2276_v24, %s3249_s26 }
0x169b   :  { %v2178_v13 = vpop.permute.xlu0 %2177 }
0x169c   :  { %v2279_v60 = vpop.permute.xlu1 %2278  ;;  %2929 = vmatmul.mubr.msk.f32.vlgmr.msra.gmra.mrb[28].mxu0 %vm203_vm5, %v2178_v13 }
0x169d   :  { %2940 = vmatmul.mubr.msk.f32.vlgmr.msra.gmra.mrb[24].mxu1 %vm203_vm5, %v2279_v60  ;;  %2950 = vmatprep.mubr.msk.f32.mxu0 %vm3246_vm1, %v3247_v4 }
0x169e   :  { %3103 = vmatpush3.bf16.msra.mxu0 %v3102_v43 }
0x169f   :  { %3104 = vmatprep.subr.bf16.mxu0 %v3245_v0 }
0x16a2   :  { %3106 = vmatpush3.bf16.msra.mxu0 %v3105_v8 }
0x176f   :  { %v2247_v26 = vpop.f32.mrb[28].mxu0 }
0x1770   :  { %v2348_v27 = vpop.f32.mrb[24].mxu1  ;;  %v2930_v28 = vpop.f32.mrb[29].mxu0 }
0x1771   :  { %v2349_v29 = vadd.f32 %v2348_v27, %v2247_v26  ;;  %v2941_v30 = vpop.f32.mrb[25].mxu1 }
0x1773   :  { %v2352_v31 = vadd.f32 %v3466_v2, %v2349_v29 }
0x1775   :  { %v2523_v32 = vmul.f32 -1.442695, %v2352_v31 }
0x1777   :  { %3232 = vpow2.f32 %v2523_v32 }
0x1778   :  { %3234 = vtanh.f32 %v2352_v31 }
0x1781   :  { %v3233_v34 = vpop.eup %3232 }
0x1782   :  { %v2357_v36 = vadd.f32 1.0, %v3233_v34  ;;  %v3235_v35 = vpop.eup %3234 }
0x1784   :  { %3236 = vrcp.f32 %v2357_v36 }
0x178e   :  { %v3237_v57 = vpop.eup %3236 }
0x178f   :  { %v2360_v37 = vsel %vm3349_vm4, %v3235_v35, %v3237_v57 }
0x1790   :  { %2363 = vrot.lane.b32.xlu0 %v2360_v37, %s3248_s25  ;;  %v2361_v39 = vmul.f32 %v2360_v37, %v2099_v18 }
0x1802   :  { %v2364_v4 = vpop.permute.xlu0 %2363 }
0x1803   :  { %v2366_v38 = vmul.f32 %v2364_v4, %v2360_v37 }
0x1805   :  { %2368 = vrot.lane.b32.xlu1 %v2366_v38, %s3249_s26 }
0x1877   :  { %v2369_v41 = vpop.permute.xlu1 %2368 }
0x1878   :  { %v2371_v2 = vadd.f32 %v2369_v41, %v2361_v39 }
0x187a   :  { %3238 = vtanh.f32 %v2371_v2 }
0x1884   :  { %v3239_v12 = vpop.eup %3238 }
0x1885   :  { %2374 = vrot.lane.b32.xlu0 %v3239_v12, %s3248_s25 }
0x18f7   :  { %v2375_v44 = vpop.permute.xlu0 %2374 }
0x18f8   :  { %v2377_v46 = vmul.f32 %v2375_v44, %v2360_v37 }
0x18fa   :  { %2390 = vrot.lane.b32.xlu1 %v2377_v46, %s3249_s26 }
0x196c   :  { %v2391_v47 = vpop.permute.xlu1 %2390 }
0x196d   :  { %2951 = vmatmul.mubr.msk.f32.vlgmr.msra.gmra.mrb[30].mxu0 %vm203_vm5, %v2391_v47 }
0x1a40   :  { %v2460_v49 = vpop.f32.mrb[30].mxu0 }
0x1a41   :  { %v2461_v58 = vadd.f32 %v2524_v40, %v2460_v49  ;;  %v2952_v51 = vpop.f32.mrb[31].mxu0 }
0x1a43   :  { %v2526_v52 = vmul.f32 -1.442695, %v2461_v58 }
0x1a45   :  { %3240 = vpow2.f32 %v2526_v52 }
0x1a4f   :  { %v3241_v0 = vpop.eup %3240 }
0x1a50   :  { %v2467_v50 = vadd.f32 1.0, %v3241_v0 }
0x1a52   :  { %3242 = vrcp.f32 %v2467_v50 }
0x1a5c   :  { %v3243_v53 = vpop.eup %3242 }
0x1a5d   :  { %2471 = vst.msk [vmem:[%s3787_s9] sm:$0xff] %vm2470_vm6, %v3243_v53 }

</bundles_post_ra>
